<compile_context>
chip_gen: v7x
topology: tpu7x:2x2x1
jax: 0.10.0
libtpu: 0.0.40
codegen_flags: <defaults>
</compile_context>

<pallas_src>
import math
import functools

import jax
import jax.numpy as jnp
from jax.experimental import pallas as pl
from jax.experimental.pallas import tpu as pltpu  # noqa: F401  (TPU backend import)

CFG = dict(
    vocab_size=128,
    context_length=8,
    d_e=32,
    n_heads=4,
    n_layers=2,
    p_dropout=0.0,      # dropout with p=0.0 is the identity (matches eval mode)
    qkv_bias=True,
)
LN_EPS = 1e-5
NEG_BIG = -1e30         # finite "minus infinity" for masking (robust, no NaN risk)


# ----------------------------- in-kernel math ------------------------------

def _layer_norm(x, gamma, beta):
    mean = jnp.mean(x, axis=-1, keepdims=True)
    var = jnp.mean((x - mean) ** 2, axis=-1, keepdims=True)
    return (x - mean) * jax.lax.rsqrt(var + LN_EPS) * gamma + beta


def _gelu_tanh(x):
    c = math.sqrt(2.0 / math.pi)
    return 0.5 * x * (1.0 + jnp.tanh(c * (x + 0.044715 * x * x * x)))


# --------------------------- fused GPT kernel -------------------------------
# refs = (x, [12 params per layer] * n_layers, lnf_g, lnf_b, w_out, b_out, out)

def gpt_fused_kernel(*refs, n_layers, n_heads):
    x_ref = refs[0]
    o_ref = refs[-1]
    p_refs = refs[1:-1]

    B, T, D = x_ref.shape
    V = o_ref.shape[-1]
    d_h = D // n_heads
    scale = 1.0 / math.sqrt(d_h)

    # activations stay in VMEM/vregs for the whole forward
    x = x_ref[...].astype(jnp.float32).reshape(B * T, D)

    # causal mask, built once, shared by all layers/heads
    row = jax.lax.broadcasted_iota(jnp.int32, (B, T, T), 1)
    col = jax.lax.broadcasted_iota(jnp.int32, (B, T, T), 2)
    causal_mask = col > row                      # True => masked (strict upper tri)

    idx = 0
    for _ in range(n_layers):                    # static unroll over layers
        (wqkv, bqkv, wo, bo,
         ln1g, ln1b, ln2g, ln2b,
         w1, b1, w2, b2) = p_refs[idx:idx + 12]
        idx += 12

        # ---- attention sub-block: x = x + W_o(MHA(LN1(x))) ----
        xn = _layer_norm(x, ln1g[...], ln1b[...])
        qkv = jnp.dot(xn, wqkv[...], preferred_element_type=jnp.float32) + bqkv[...]
        q = (qkv[:, :D] * scale).reshape(B, T, D)     # scale folded into q
        k = qkv[:, D:2 * D].reshape(B, T, D)
        v = qkv[:, 2 * D:].reshape(B, T, D)

        ctx_parts = []
        for h in range(n_heads):                 # static unroll over heads
            sl = slice(h * d_h, (h + 1) * d_h)
            s = jnp.einsum("btd,bsd->bts", q[:, :, sl], k[:, :, sl],
                           preferred_element_type=jnp.float32)
            s = jnp.where(causal_mask, NEG_BIG, s)
            s = s - jnp.max(s, axis=-1, keepdims=True)
            p = jnp.exp(s)
            p = p / jnp.sum(p, axis=-1, keepdims=True)
            ctx_parts.append(jnp.einsum("bts,bsd->btd", p, v[:, :, sl],
                                        preferred_element_type=jnp.float32))
        ctx = jnp.concatenate(ctx_parts, axis=-1).reshape(B * T, D)
        x = x + (jnp.dot(ctx, wo[...], preferred_element_type=jnp.float32) + bo[...])

        # ---- MLP sub-block: x = x + MLP(LN2(x)) ----
        xn2 = _layer_norm(x, ln2g[...], ln2b[...])
        h1 = jnp.dot(xn2, w1[...], preferred_element_type=jnp.float32) + b1[...]
        h1 = _gelu_tanh(h1)
        x = x + (jnp.dot(h1, w2[...], preferred_element_type=jnp.float32) + b2[...])

    # ---- final LN + LM head ----
    lnf_g, lnf_b, w_out, b_out = p_refs[idx:idx + 4]
    xn = _layer_norm(x, lnf_g[...], lnf_b[...])
    logits = jnp.dot(xn, w_out[...], preferred_element_type=jnp.float32) + b_out[...]
    o_ref[...] = logits.reshape(B, T, V)          # V=128 -> lane-dense stores


# ------------------------------ wrapper --------------------------------------

def _flatten_params(params):
    flat = []
    for blk in params["blocks"]:
        flat += [blk["wqkv"], blk["bqkv"], blk["wo"], blk["bo"],
                 blk["ln1g"], blk["ln1b"], blk["ln2g"], blk["ln2b"],
                 blk["w1"], blk["b1"], blk["w2"], blk["b2"]]
    flat += [params["lnf_g"], params["lnf_b"], params["w_out"], params["b_out"]]
    return flat


def gpt_forward(token_idx, params, cfg):
    B, T = token_idx.shape
    V = cfg["vocab_size"]
    tok = jnp.take(params["tok_emb"], token_idx, axis=0)       # (B, T, D) glue gather
    pos = params["pos_emb"][:T][None, :, :]                    # (1, T, D) glue
    x = (tok + pos).astype(jnp.float32)                        # dropout(p=0) == identity

    kernel = functools.partial(gpt_fused_kernel,
                               n_layers=cfg["n_layers"], n_heads=cfg["n_heads"])
    # Single grid-less pallas_call: every input is a whole-array VMEM block,
    # no grid steps, no per-layer HBM activation traffic.
    return pl.pallas_call(
        kernel,
        out_shape=jax.ShapeDtypeStruct((B, T, V), jnp.float32),
    )(x, *_flatten_params(params))


# --------------------------- parameter init ----------------------------------

def init_params(cfg, key):
    D, V, C = cfg["d_e"], cfg["vocab_size"], cfg["context_length"]
    counter = [0]

    def nrm(shape, s=0.02):
        counter[0] += 1                           # fold_in: can never run out of keys
        k = jax.random.fold_in(key, counter[0])
        return (s * jax.random.normal(k, shape)).astype(jnp.float32)

    params = dict(
        tok_emb=nrm((V, D)),
        pos_emb=nrm((C, D)),
        lnf_g=jnp.ones((1, D), jnp.float32),
        lnf_b=jnp.zeros((1, D), jnp.float32),
        w_out=nrm((D, V)),
        b_out=jnp.zeros((1, V), jnp.float32),
        blocks=[],
    )
    for _ in range(cfg["n_layers"]):
        blk = dict(
            wqkv=nrm((D, 3 * D)), bqkv=nrm((1, 3 * D)),   # fused [Wq | Wk | Wv]
            wo=nrm((D, D)), bo=nrm((1, D)),
            ln1g=jnp.ones((1, D), jnp.float32), ln1b=jnp.zeros((1, D), jnp.float32),
            ln2g=jnp.ones((1, D), jnp.float32), ln2b=jnp.zeros((1, D), jnp.float32),
            w1=nrm((D, 4 * D)), b1=nrm((1, 4 * D)),
            w2=nrm((4 * D, D)), b2=nrm((1, D)),
        )
        params["blocks"].append(blk)
    return params


# ---------------------------- pure-JAX reference ------------------------------

def _ref_forward(token_idx, params, cfg):
    D = cfg["d_e"]; H = cfg["n_heads"]; d_h = D // H
    B, T = token_idx.shape
    x = jnp.take(params["tok_emb"], token_idx, axis=0) + params["pos_emb"][:T][None]
    ln = lambda a, g, b: (a - a.mean(-1, keepdims=True)) * jax.lax.rsqrt(
        a.var(-1, keepdims=True) + LN_EPS) * g + b
    for p in params["blocks"]:
        xn = ln(x, p["ln1g"], p["ln1b"])
        wq, wk, wv = p["wqkv"][:, :D], p["wqkv"][:, D:2 * D], p["wqkv"][:, 2 * D:]
        bq, bk, bv = p["bqkv"][:, :D], p["bqkv"][:, D:2 * D], p["bqkv"][:, 2 * D:]
        q = xn @ wq + bq; k = xn @ wk + bk; v = xn @ wv + bv
        q = q.reshape(B, T, H, d_h).transpose(0, 2, 1, 3)
        k = k.reshape(B, T, H, d_h).transpose(0, 2, 1, 3)
        v = v.reshape(B, T, H, d_h).transpose(0, 2, 1, 3)
        s = jnp.einsum("bhqd,bhkd->bhqk", q, k)
        mask = jnp.triu(jnp.ones((T, T), bool), 1)
        s = jnp.where(mask, -jnp.inf, s) / math.sqrt(d_h)
        w = jax.nn.softmax(s, axis=-1)
        ctx = jnp.einsum("bhqk,bhkd->bhqd", w, v).transpose(0, 2, 1, 3).reshape(B, T, D)
        x = x + (ctx @ p["wo"] + p["bo"])
        xn2 = ln(x, p["ln2g"], p["ln2b"])
        h1 = xn2 @ p["w1"] + p["b1"]
        h1 = 0.5 * h1 * (1 + jnp.tanh(math.sqrt(2 / math.pi) * (h1 + 0.044715 * h1 ** 3)))
        x = x + (h1 @ p["w2"] + p["b2"])
    xn = ln(x, params["lnf_g"], params["lnf_b"])
    return xn @ params["w_out"] + params["b_out"]


# ---------------------------------- main --------------------------------------

if __name__ == "__main__":
    key = jax.random.PRNGKey(0)
    k_params, k_tok = jax.random.split(key)

    params = init_params(CFG, k_params)

    B, T = 2, CFG["context_length"]
    token_idx = jax.random.randint(k_tok, (B, T), 0, CFG["vocab_size"], dtype=jnp.int32)

    fwd = jax.jit(functools.partial(gpt_forward, cfg=CFG))
    logits = jax.block_until_ready(fwd(token_idx, params))

    assert logits.shape == (B, T, CFG["vocab_size"]), logits.shape
    assert bool(jnp.all(jnp.isfinite(logits)))

    ref = _ref_forward(token_idx, params, CFG)
    assert bool(jnp.allclose(logits, ref, atol=1e-4, rtol=1e-4)), \
        float(jnp.max(jnp.abs(logits - ref)))

    # TODO(synk): tiktoken encode/decode and the sampling loop in generate() are
    # host-side utilities with no Pallas equivalent; only forward() is kernelized.
    print("KERNEL_OK")
</pallas_src>

<mosaic_0001>
module attributes {stable_mosaic.version = 11 : i64} {
  func.func @gpt_fused_kernel(%arg0: memref<2x8x32xf32, #tpu.memory_space<vmem>>, %arg1: memref<32x96xf32, #tpu.memory_space<vmem>>, %arg2: memref<1x96xf32, #tpu.memory_space<vmem>>, %arg3: memref<32x32xf32, #tpu.memory_space<vmem>>, %arg4: memref<1x32xf32, #tpu.memory_space<vmem>>, %arg5: memref<1x32xf32, #tpu.memory_space<vmem>>, %arg6: memref<1x32xf32, #tpu.memory_space<vmem>>, %arg7: memref<1x32xf32, #tpu.memory_space<vmem>>, %arg8: memref<1x32xf32, #tpu.memory_space<vmem>>, %arg9: memref<32x128xf32, #tpu.memory_space<vmem>>, %arg10: memref<1x128xf32, #tpu.memory_space<vmem>>, %arg11: memref<128x32xf32, #tpu.memory_space<vmem>>, %arg12: memref<1x32xf32, #tpu.memory_space<vmem>>, %arg13: memref<32x96xf32, #tpu.memory_space<vmem>>, %arg14: memref<1x96xf32, #tpu.memory_space<vmem>>, %arg15: memref<32x32xf32, #tpu.memory_space<vmem>>, %arg16: memref<1x32xf32, #tpu.memory_space<vmem>>, %arg17: memref<1x32xf32, #tpu.memory_space<vmem>>, %arg18: memref<1x32xf32, #tpu.memory_space<vmem>>, %arg19: memref<1x32xf32, #tpu.memory_space<vmem>>, %arg20: memref<1x32xf32, #tpu.memory_space<vmem>>, %arg21: memref<32x128xf32, #tpu.memory_space<vmem>>, %arg22: memref<1x128xf32, #tpu.memory_space<vmem>>, %arg23: memref<128x32xf32, #tpu.memory_space<vmem>>, %arg24: memref<1x32xf32, #tpu.memory_space<vmem>>, %arg25: memref<1x32xf32, #tpu.memory_space<vmem>>, %arg26: memref<1x32xf32, #tpu.memory_space<vmem>>, %arg27: memref<32x128xf32, #tpu.memory_space<vmem>>, %arg28: memref<1x128xf32, #tpu.memory_space<vmem>>, %arg29: memref<2x8x128xf32, #tpu.memory_space<vmem>>) attributes {dimension_semantics = [], scalar_prefetch = 0 : i64, scratch_operands = 0 : i64, tpu.core_type = #tpu.core_type<tc>} {
    %c0 = arith.constant 0 : index
    %c0_0 = arith.constant 0 : index
    %c0_1 = arith.constant 0 : index
    %0 = vector.load %arg0[%c0, %c0_0, %c0_1] : memref<2x8x32xf32, #tpu.memory_space<vmem>>, vector<2x8x32xf32>
    %1 = vector.shape_cast %0 : vector<2x8x32xf32> to vector<16x32xf32>
    %2 = tpu.iota {dimensions = array<i32: 1>} : vector<2x8x8xi32>
    %3 = tpu.iota {dimensions = array<i32: 2>} : vector<2x8x8xi32>
    %4 = arith.cmpi sgt, %3, %2 : vector<2x8x8xi32>
    %c0_2 = arith.constant 0 : index
    %c0_3 = arith.constant 0 : index
    %5 = vector.load %arg5[%c0_2, %c0_3] : memref<1x32xf32, #tpu.memory_space<vmem>>, vector<1x32xf32>
    %c0_4 = arith.constant 0 : index
    %c0_5 = arith.constant 0 : index
    %6 = vector.load %arg6[%c0_4, %c0_5] : memref<1x32xf32, #tpu.memory_space<vmem>>, vector<1x32xf32>
    %cst = arith.constant dense<0.000000e+00> : vector<16xf32>
    %7 = vector.multi_reduction <add>, %1, %cst [1] : vector<16x32xf32> to vector<16xf32>
    %8 = vector.shape_cast %7 : vector<16xf32> to vector<16x1xf32>
    %cst_6 = arith.constant 3.200000e+01 : f32
    %9 = vector.broadcast %cst_6 : f32 to vector<16x1xf32>
    %10 = arith.divf %8, %9 : vector<16x1xf32>
    %11 = vector.broadcast %10 : vector<16x1xf32> to vector<16x32xf32>
    %12 = arith.subf %1, %11 : vector<16x32xf32>
    %13 = arith.mulf %12, %12 : vector<16x32xf32>
    %cst_7 = arith.constant dense<0.000000e+00> : vector<16xf32>
    %14 = vector.multi_reduction <add>, %13, %cst_7 [1] : vector<16x32xf32> to vector<16xf32>
    %15 = vector.shape_cast %14 : vector<16xf32> to vector<16x1xf32>
    %cst_8 = arith.constant 3.200000e+01 : f32
    %16 = vector.broadcast %cst_8 : f32 to vector<16x1xf32>
    %17 = arith.divf %15, %16 : vector<16x1xf32>
    %18 = vector.broadcast %10 : vector<16x1xf32> to vector<16x32xf32>
    %19 = arith.subf %1, %18 : vector<16x32xf32>
    %cst_9 = arith.constant 9.99999974E-6 : f32
    %20 = vector.broadcast %cst_9 : f32 to vector<16x1xf32>
    %21 = arith.addf %17, %20 : vector<16x1xf32>
    %22 = math.rsqrt %21 : vector<16x1xf32>
    %23 = vector.broadcast %22 : vector<16x1xf32> to vector<16x32xf32>
    %24 = arith.mulf %19, %23 : vector<16x32xf32>
    %25 = vector.broadcast %5 : vector<1x32xf32> to vector<16x32xf32>
    %26 = arith.mulf %24, %25 : vector<16x32xf32>
    %27 = vector.broadcast %6 : vector<1x32xf32> to vector<16x32xf32>
    %28 = arith.addf %26, %27 : vector<16x32xf32>
    %c0_10 = arith.constant 0 : index
    %c0_11 = arith.constant 0 : index
    %29 = vector.load %arg1[%c0_10, %c0_11] : memref<32x96xf32, #tpu.memory_space<vmem>>, vector<32x96xf32>
    %cst_12 = arith.constant dense<0.000000e+00> : vector<16x96xf32>
    %30 = tpu.matmul %28, %29, %cst_12 {dimension_numbers = #tpu.dot_dimension_numbers<[1], [0], [0], [1], [0, 0, 1, 1], [], []>} : vector<16x32xf32>, vector<32x96xf32>, vector<16x96xf32> -> vector<16x96xf32>
    %c0_13 = arith.constant 0 : index
    %c0_14 = arith.constant 0 : index
    %31 = vector.load %arg2[%c0_13, %c0_14] : memref<1x96xf32, #tpu.memory_space<vmem>>, vector<1x96xf32>
    %32 = vector.broadcast %31 : vector<1x96xf32> to vector<16x96xf32>
    %33 = arith.addf %30, %32 : vector<16x96xf32>
    %34 = vector.extract_strided_slice %33 {offsets = [0, 0], sizes = [16, 32], strides = [1, 1]} : vector<16x96xf32> to vector<16x32xf32>
    %cst_15 = arith.constant 0.353553385 : f32
    %35 = vector.broadcast %cst_15 : f32 to vector<16x32xf32>
    %36 = arith.mulf %34, %35 : vector<16x32xf32>
    %37 = vector.shape_cast %36 : vector<16x32xf32> to vector<2x8x32xf32>
    %38 = vector.extract_strided_slice %33 {offsets = [0, 32], sizes = [16, 32], strides = [1, 1]} : vector<16x96xf32> to vector<16x32xf32>
    %39 = vector.shape_cast %38 : vector<16x32xf32> to vector<2x8x32xf32>
    %40 = vector.extract_strided_slice %33 {offsets = [0, 64], sizes = [16, 32], strides = [1, 1]} : vector<16x96xf32> to vector<16x32xf32>
    %41 = vector.shape_cast %40 : vector<16x32xf32> to vector<2x8x32xf32>
    %42 = vector.extract_strided_slice %37 {offsets = [0, 0, 0], sizes = [2, 8, 8], strides = [1, 1, 1]} : vector<2x8x32xf32> to vector<2x8x8xf32>
    %43 = vector.extract_strided_slice %39 {offsets = [0, 0, 0], sizes = [2, 8, 8], strides = [1, 1, 1]} : vector<2x8x32xf32> to vector<2x8x8xf32>
    "tpu.trace_start"() <{level = 10 : i32, message = "btd,bsd->bts"}> : () -> ()
    %cst_16 = arith.constant dense<0.000000e+00> : vector<2x8x8xf32>
    %44 = tpu.matmul %42, %43, %cst_16 {dimension_numbers = #tpu.dot_dimension_numbers<[2], [2], [1], [1], [0, 0, 0, 1, 1, 1], [0], [0]>} : vector<2x8x8xf32>, vector<2x8x8xf32>, vector<2x8x8xf32> -> vector<2x8x8xf32>
    %cst_17 = arith.constant -1.000000e+30 : f32
    "tpu.trace_stop"() : () -> ()
    %45 = vector.broadcast %cst_17 : f32 to vector<2x8x8xf32>
    %46 = arith.select %4, %45, %44 : vector<2x8x8xi1>, vector<2x8x8xf32>
    %cst_18 = arith.constant dense<0xFF800000> : vector<2x8xf32>
    %47 = vector.multi_reduction <maximumf>, %46, %cst_18 [2] : vector<2x8x8xf32> to vector<2x8xf32>
    %48 = vector.shape_cast %47 : vector<2x8xf32> to vector<2x8x1xf32>
    %49 = vector.broadcast %48 : vector<2x8x1xf32> to vector<2x8x8xf32>
    %50 = arith.subf %46, %49 : vector<2x8x8xf32>
    %51 = math.exp %50 : vector<2x8x8xf32>
    %cst_19 = arith.constant dense<0.000000e+00> : vector<2x8xf32>
    %52 = vector.multi_reduction <add>, %51, %cst_19 [2] : vector<2x8x8xf32> to vector<2x8xf32>
    %53 = vector.shape_cast %52 : vector<2x8xf32> to vector<2x8x1xf32>
    %54 = vector.broadcast %53 : vector<2x8x1xf32> to vector<2x8x8xf32>
    %55 = arith.divf %51, %54 : vector<2x8x8xf32>
    %56 = vector.extract_strided_slice %41 {offsets = [0, 0, 0], sizes = [2, 8, 8], strides = [1, 1, 1]} : vector<2x8x32xf32> to vector<2x8x8xf32>
    "tpu.trace_start"() <{level = 10 : i32, message = "bts,bsd->btd"}> : () -> ()
    %cst_20 = arith.constant dense<0.000000e+00> : vector<2x8x8xf32>
    %57 = tpu.matmul %55, %56, %cst_20 {dimension_numbers = #tpu.dot_dimension_numbers<[2], [1], [1], [2], [0, 0, 0, 1, 1, 2], [0], [0]>} : vector<2x8x8xf32>, vector<2x8x8xf32>, vector<2x8x8xf32> -> vector<2x8x8xf32>
    "tpu.trace_stop"() : () -> ()
    %58 = vector.extract_strided_slice %37 {offsets = [0, 0, 8], sizes = [2, 8, 8], strides = [1, 1, 1]} : vector<2x8x32xf32> to vector<2x8x8xf32>
    %59 = vector.extract_strided_slice %39 {offsets = [0, 0, 8], sizes = [2, 8, 8], strides = [1, 1, 1]} : vector<2x8x32xf32> to vector<2x8x8xf32>
    "tpu.trace_start"() <{level = 10 : i32, message = "btd,bsd->bts"}> : () -> ()
    %cst_21 = arith.constant dense<0.000000e+00> : vector<2x8x8xf32>
    %60 = tpu.matmul %58, %59, %cst_21 {dimension_numbers = #tpu.dot_dimension_numbers<[2], [2], [1], [1], [0, 0, 0, 1, 1, 1], [0], [0]>} : vector<2x8x8xf32>, vector<2x8x8xf32>, vector<2x8x8xf32> -> vector<2x8x8xf32>
    %cst_22 = arith.constant -1.000000e+30 : f32
    "tpu.trace_stop"() : () -> ()
    %61 = vector.broadcast %cst_22 : f32 to vector<2x8x8xf32>
    %62 = arith.select %4, %61, %60 : vector<2x8x8xi1>, vector<2x8x8xf32>
    %cst_23 = arith.constant dense<0xFF800000> : vector<2x8xf32>
    %63 = vector.multi_reduction <maximumf>, %62, %cst_23 [2] : vector<2x8x8xf32> to vector<2x8xf32>
    %64 = vector.shape_cast %63 : vector<2x8xf32> to vector<2x8x1xf32>
    %65 = vector.broadcast %64 : vector<2x8x1xf32> to vector<2x8x8xf32>
    %66 = arith.subf %62, %65 : vector<2x8x8xf32>
    %67 = math.exp %66 : vector<2x8x8xf32>
    %cst_24 = arith.constant dense<0.000000e+00> : vector<2x8xf32>
    %68 = vector.multi_reduction <add>, %67, %cst_24 [2] : vector<2x8x8xf32> to vector<2x8xf32>
    %69 = vector.shape_cast %68 : vector<2x8xf32> to vector<2x8x1xf32>
    %70 = vector.broadcast %69 : vector<2x8x1xf32> to vector<2x8x8xf32>
    %71 = arith.divf %67, %70 : vector<2x8x8xf32>
    %72 = vector.extract_strided_slice %41 {offsets = [0, 0, 8], sizes = [2, 8, 8], strides = [1, 1, 1]} : vector<2x8x32xf32> to vector<2x8x8xf32>
    "tpu.trace_start"() <{level = 10 : i32, message = "bts,bsd->btd"}> : () -> ()
    %cst_25 = arith.constant dense<0.000000e+00> : vector<2x8x8xf32>
    %73 = tpu.matmul %71, %72, %cst_25 {dimension_numbers = #tpu.dot_dimension_numbers<[2], [1], [1], [2], [0, 0, 0, 1, 1, 2], [0], [0]>} : vector<2x8x8xf32>, vector<2x8x8xf32>, vector<2x8x8xf32> -> vector<2x8x8xf32>
    "tpu.trace_stop"() : () -> ()
    %74 = vector.extract_strided_slice %37 {offsets = [0, 0, 16], sizes = [2, 8, 8], strides = [1, 1, 1]} : vector<2x8x32xf32> to vector<2x8x8xf32>
    %75 = vector.extract_strided_slice %39 {offsets = [0, 0, 16], sizes = [2, 8, 8], strides = [1, 1, 1]} : vector<2x8x32xf32> to vector<2x8x8xf32>
    "tpu.trace_start"() <{level = 10 : i32, message = "btd,bsd->bts"}> : () -> ()
    %cst_26 = arith.constant dense<0.000000e+00> : vector<2x8x8xf32>
    %76 = tpu.matmul %74, %75, %cst_26 {dimension_numbers = #tpu.dot_dimension_numbers<[2], [2], [1], [1], [0, 0, 0, 1, 1, 1], [0], [0]>} : vector<2x8x8xf32>, vector<2x8x8xf32>, vector<2x8x8xf32> -> vector<2x8x8xf32>
    %cst_27 = arith.constant -1.000000e+30 : f32
    "tpu.trace_stop"() : () -> ()
    %77 = vector.broadcast %cst_27 : f32 to vector<2x8x8xf32>
    %78 = arith.select %4, %77, %76 : vector<2x8x8xi1>, vector<2x8x8xf32>
    %cst_28 = arith.constant dense<0xFF800000> : vector<2x8xf32>
    %79 = vector.multi_reduction <maximumf>, %78, %cst_28 [2] : vector<2x8x8xf32> to vector<2x8xf32>
    %80 = vector.shape_cast %79 : vector<2x8xf32> to vector<2x8x1xf32>
    %81 = vector.broadcast %80 : vector<2x8x1xf32> to vector<2x8x8xf32>
    %82 = arith.subf %78, %81 : vector<2x8x8xf32>
    %83 = math.exp %82 : vector<2x8x8xf32>
    %cst_29 = arith.constant dense<0.000000e+00> : vector<2x8xf32>
    %84 = vector.multi_reduction <add>, %83, %cst_29 [2] : vector<2x8x8xf32> to vector<2x8xf32>
    %85 = vector.shape_cast %84 : vector<2x8xf32> to vector<2x8x1xf32>
    %86 = vector.broadcast %85 : vector<2x8x1xf32> to vector<2x8x8xf32>
    %87 = arith.divf %83, %86 : vector<2x8x8xf32>
    %88 = vector.extract_strided_slice %41 {offsets = [0, 0, 16], sizes = [2, 8, 8], strides = [1, 1, 1]} : vector<2x8x32xf32> to vector<2x8x8xf32>
    "tpu.trace_start"() <{level = 10 : i32, message = "bts,bsd->btd"}> : () -> ()
    %cst_30 = arith.constant dense<0.000000e+00> : vector<2x8x8xf32>
    %89 = tpu.matmul %87, %88, %cst_30 {dimension_numbers = #tpu.dot_dimension_numbers<[2], [1], [1], [2], [0, 0, 0, 1, 1, 2], [0], [0]>} : vector<2x8x8xf32>, vector<2x8x8xf32>, vector<2x8x8xf32> -> vector<2x8x8xf32>
    "tpu.trace_stop"() : () -> ()
    %90 = vector.extract_strided_slice %37 {offsets = [0, 0, 24], sizes = [2, 8, 8], strides = [1, 1, 1]} : vector<2x8x32xf32> to vector<2x8x8xf32>
    %91 = vector.extract_strided_slice %39 {offsets = [0, 0, 24], sizes = [2, 8, 8], strides = [1, 1, 1]} : vector<2x8x32xf32> to vector<2x8x8xf32>
    "tpu.trace_start"() <{level = 10 : i32, message = "btd,bsd->bts"}> : () -> ()
    %cst_31 = arith.constant dense<0.000000e+00> : vector<2x8x8xf32>
    %92 = tpu.matmul %90, %91, %cst_31 {dimension_numbers = #tpu.dot_dimension_numbers<[2], [2], [1], [1], [0, 0, 0, 1, 1, 1], [0], [0]>} : vector<2x8x8xf32>, vector<2x8x8xf32>, vector<2x8x8xf32> -> vector<2x8x8xf32>
    %cst_32 = arith.constant -1.000000e+30 : f32
    "tpu.trace_stop"() : () -> ()
    %93 = vector.broadcast %cst_32 : f32 to vector<2x8x8xf32>
    %94 = arith.select %4, %93, %92 : vector<2x8x8xi1>, vector<2x8x8xf32>
    %cst_33 = arith.constant dense<0xFF800000> : vector<2x8xf32>
    %95 = vector.multi_reduction <maximumf>, %94, %cst_33 [2] : vector<2x8x8xf32> to vector<2x8xf32>
    %96 = vector.shape_cast %95 : vector<2x8xf32> to vector<2x8x1xf32>
    %97 = vector.broadcast %96 : vector<2x8x1xf32> to vector<2x8x8xf32>
    %98 = arith.subf %94, %97 : vector<2x8x8xf32>
    %99 = math.exp %98 : vector<2x8x8xf32>
    %cst_34 = arith.constant dense<0.000000e+00> : vector<2x8xf32>
    %100 = vector.multi_reduction <add>, %99, %cst_34 [2] : vector<2x8x8xf32> to vector<2x8xf32>
    %101 = vector.shape_cast %100 : vector<2x8xf32> to vector<2x8x1xf32>
    %102 = vector.broadcast %101 : vector<2x8x1xf32> to vector<2x8x8xf32>
    %103 = arith.divf %99, %102 : vector<2x8x8xf32>
    %104 = vector.extract_strided_slice %41 {offsets = [0, 0, 24], sizes = [2, 8, 8], strides = [1, 1, 1]} : vector<2x8x32xf32> to vector<2x8x8xf32>
    "tpu.trace_start"() <{level = 10 : i32, message = "bts,bsd->btd"}> : () -> ()
    %cst_35 = arith.constant dense<0.000000e+00> : vector<2x8x8xf32>
    %105 = tpu.matmul %103, %104, %cst_35 {dimension_numbers = #tpu.dot_dimension_numbers<[2], [1], [1], [2], [0, 0, 0, 1, 1, 2], [0], [0]>} : vector<2x8x8xf32>, vector<2x8x8xf32>, vector<2x8x8xf32> -> vector<2x8x8xf32>
    "tpu.trace_stop"() : () -> ()
    %106 = tpu.concatenate %57, %73, %89, %105 in 2 : vector<2x8x8xf32>, vector<2x8x8xf32>, vector<2x8x8xf32>, vector<2x8x8xf32> -> vector<2x8x32xf32>
    %107 = vector.shape_cast %106 : vector<2x8x32xf32> to vector<16x32xf32>
    %c0_36 = arith.constant 0 : index
    %c0_37 = arith.constant 0 : index
    %108 = vector.load %arg3[%c0_36, %c0_37] : memref<32x32xf32, #tpu.memory_space<vmem>>, vector<32x32xf32>
    %cst_38 = arith.constant dense<0.000000e+00> : vector<16x32xf32>
    %109 = tpu.matmul %107, %108, %cst_38 {dimension_numbers = #tpu.dot_dimension_numbers<[1], [0], [0], [1], [0, 0, 1, 1], [], []>} : vector<16x32xf32>, vector<32x32xf32>, vector<16x32xf32> -> vector<16x32xf32>
    %c0_39 = arith.constant 0 : index
    %c0_40 = arith.constant 0 : index
    %110 = vector.load %arg4[%c0_39, %c0_40] : memref<1x32xf32, #tpu.memory_space<vmem>>, vector<1x32xf32>
    %111 = vector.broadcast %110 : vector<1x32xf32> to vector<16x32xf32>
    %112 = arith.addf %109, %111 : vector<16x32xf32>
    %113 = arith.addf %1, %112 : vector<16x32xf32>
    %c0_41 = arith.constant 0 : index
    %c0_42 = arith.constant 0 : index
    %114 = vector.load %arg7[%c0_41, %c0_42] : memref<1x32xf32, #tpu.memory_space<vmem>>, vector<1x32xf32>
    %c0_43 = arith.constant 0 : index
    %c0_44 = arith.constant 0 : index
    %115 = vector.load %arg8[%c0_43, %c0_44] : memref<1x32xf32, #tpu.memory_space<vmem>>, vector<1x32xf32>
    %cst_45 = arith.constant dense<0.000000e+00> : vector<16xf32>
    %116 = vector.multi_reduction <add>, %113, %cst_45 [1] : vector<16x32xf32> to vector<16xf32>
    %117 = vector.shape_cast %116 : vector<16xf32> to vector<16x1xf32>
    %cst_46 = arith.constant 3.200000e+01 : f32
    %118 = vector.broadcast %cst_46 : f32 to vector<16x1xf32>
    %119 = arith.divf %117, %118 : vector<16x1xf32>
    %120 = vector.broadcast %119 : vector<16x1xf32> to vector<16x32xf32>
    %121 = arith.subf %113, %120 : vector<16x32xf32>
    %122 = arith.mulf %121, %121 : vector<16x32xf32>
    %cst_47 = arith.constant dense<0.000000e+00> : vector<16xf32>
    %123 = vector.multi_reduction <add>, %122, %cst_47 [1] : vector<16x32xf32> to vector<16xf32>
    %124 = vector.shape_cast %123 : vector<16xf32> to vector<16x1xf32>
    %cst_48 = arith.constant 3.200000e+01 : f32
    %125 = vector.broadcast %cst_48 : f32 to vector<16x1xf32>
    %126 = arith.divf %124, %125 : vector<16x1xf32>
    %127 = vector.broadcast %119 : vector<16x1xf32> to vector<16x32xf32>
    %128 = arith.subf %113, %127 : vector<16x32xf32>
    %cst_49 = arith.constant 9.99999974E-6 : f32
    %129 = vector.broadcast %cst_49 : f32 to vector<16x1xf32>
    %130 = arith.addf %126, %129 : vector<16x1xf32>
    %131 = math.rsqrt %130 : vector<16x1xf32>
    %132 = vector.broadcast %131 : vector<16x1xf32> to vector<16x32xf32>
    %133 = arith.mulf %128, %132 : vector<16x32xf32>
    %134 = vector.broadcast %114 : vector<1x32xf32> to vector<16x32xf32>
    %135 = arith.mulf %133, %134 : vector<16x32xf32>
    %136 = vector.broadcast %115 : vector<1x32xf32> to vector<16x32xf32>
    %137 = arith.addf %135, %136 : vector<16x32xf32>
    %c0_50 = arith.constant 0 : index
    %c0_51 = arith.constant 0 : index
    %138 = vector.load %arg9[%c0_50, %c0_51] : memref<32x128xf32, #tpu.memory_space<vmem>>, vector<32x128xf32>
    %cst_52 = arith.constant dense<0.000000e+00> : vector<16x128xf32>
    %139 = tpu.matmul %137, %138, %cst_52 {dimension_numbers = #tpu.dot_dimension_numbers<[1], [0], [0], [1], [0, 0, 1, 1], [], []>} : vector<16x32xf32>, vector<32x128xf32>, vector<16x128xf32> -> vector<16x128xf32>
    %c0_53 = arith.constant 0 : index
    %c0_54 = arith.constant 0 : index
    %140 = vector.load %arg10[%c0_53, %c0_54] : memref<1x128xf32, #tpu.memory_space<vmem>>, vector<1x128xf32>
    %141 = vector.broadcast %140 : vector<1x128xf32> to vector<16x128xf32>
    %142 = arith.addf %139, %141 : vector<16x128xf32>
    %cst_55 = arith.constant 5.000000e-01 : f32
    %143 = vector.broadcast %cst_55 : f32 to vector<16x128xf32>
    %144 = arith.mulf %143, %142 : vector<16x128xf32>
    %cst_56 = arith.constant 4.471500e-02 : f32
    %145 = vector.broadcast %cst_56 : f32 to vector<16x128xf32>
    %146 = arith.mulf %145, %142 : vector<16x128xf32>
    %147 = arith.mulf %146, %142 : vector<16x128xf32>
    %148 = arith.mulf %147, %142 : vector<16x128xf32>
    %149 = arith.addf %142, %148 : vector<16x128xf32>
    %cst_57 = arith.constant 0.797884583 : f32
    %150 = vector.broadcast %cst_57 : f32 to vector<16x128xf32>
    %151 = arith.mulf %150, %149 : vector<16x128xf32>
    %152 = math.tanh %151 : vector<16x128xf32>
    %cst_58 = arith.constant 1.000000e+00 : f32
    %153 = vector.broadcast %cst_58 : f32 to vector<16x128xf32>
    %154 = arith.addf %153, %152 : vector<16x128xf32>
    %155 = arith.mulf %144, %154 : vector<16x128xf32>
    %c0_59 = arith.constant 0 : index
    %c0_60 = arith.constant 0 : index
    %156 = vector.load %arg11[%c0_59, %c0_60] : memref<128x32xf32, #tpu.memory_space<vmem>>, vector<128x32xf32>
    %cst_61 = arith.constant dense<0.000000e+00> : vector<16x32xf32>
    %157 = tpu.matmul %155, %156, %cst_61 {dimension_numbers = #tpu.dot_dimension_numbers<[1], [0], [0], [1], [0, 0, 1, 1], [], []>} : vector<16x128xf32>, vector<128x32xf32>, vector<16x32xf32> -> vector<16x32xf32>
    %c0_62 = arith.constant 0 : index
    %c0_63 = arith.constant 0 : index
    %158 = vector.load %arg12[%c0_62, %c0_63] : memref<1x32xf32, #tpu.memory_space<vmem>>, vector<1x32xf32>
    %159 = vector.broadcast %158 : vector<1x32xf32> to vector<16x32xf32>
    %160 = arith.addf %157, %159 : vector<16x32xf32>
    %161 = arith.addf %113, %160 : vector<16x32xf32>
    %c0_64 = arith.constant 0 : index
    %c0_65 = arith.constant 0 : index
    %162 = vector.load %arg17[%c0_64, %c0_65] : memref<1x32xf32, #tpu.memory_space<vmem>>, vector<1x32xf32>
    %c0_66 = arith.constant 0 : index
    %c0_67 = arith.constant 0 : index
    %163 = vector.load %arg18[%c0_66, %c0_67] : memref<1x32xf32, #tpu.memory_space<vmem>>, vector<1x32xf32>
    %cst_68 = arith.constant dense<0.000000e+00> : vector<16xf32>
    %164 = vector.multi_reduction <add>, %161, %cst_68 [1] : vector<16x32xf32> to vector<16xf32>
    %165 = vector.shape_cast %164 : vector<16xf32> to vector<16x1xf32>
    %cst_69 = arith.constant 3.200000e+01 : f32
    %166 = vector.broadcast %cst_69 : f32 to vector<16x1xf32>
    %167 = arith.divf %165, %166 : vector<16x1xf32>
    %168 = vector.broadcast %167 : vector<16x1xf32> to vector<16x32xf32>
    %169 = arith.subf %161, %168 : vector<16x32xf32>
    %170 = arith.mulf %169, %169 : vector<16x32xf32>
    %cst_70 = arith.constant dense<0.000000e+00> : vector<16xf32>
    %171 = vector.multi_reduction <add>, %170, %cst_70 [1] : vector<16x32xf32> to vector<16xf32>
    %172 = vector.shape_cast %171 : vector<16xf32> to vector<16x1xf32>
    %cst_71 = arith.constant 3.200000e+01 : f32
    %173 = vector.broadcast %cst_71 : f32 to vector<16x1xf32>
    %174 = arith.divf %172, %173 : vector<16x1xf32>
    %175 = vector.broadcast %167 : vector<16x1xf32> to vector<16x32xf32>
    %176 = arith.subf %161, %175 : vector<16x32xf32>
    %cst_72 = arith.constant 9.99999974E-6 : f32
    %177 = vector.broadcast %cst_72 : f32 to vector<16x1xf32>
    %178 = arith.addf %174, %177 : vector<16x1xf32>
    %179 = math.rsqrt %178 : vector<16x1xf32>
    %180 = vector.broadcast %179 : vector<16x1xf32> to vector<16x32xf32>
    %181 = arith.mulf %176, %180 : vector<16x32xf32>
    %182 = vector.broadcast %162 : vector<1x32xf32> to vector<16x32xf32>
    %183 = arith.mulf %181, %182 : vector<16x32xf32>
    %184 = vector.broadcast %163 : vector<1x32xf32> to vector<16x32xf32>
    %185 = arith.addf %183, %184 : vector<16x32xf32>
    %c0_73 = arith.constant 0 : index
    %c0_74 = arith.constant 0 : index
    %186 = vector.load %arg13[%c0_73, %c0_74] : memref<32x96xf32, #tpu.memory_space<vmem>>, vector<32x96xf32>
    %cst_75 = arith.constant dense<0.000000e+00> : vector<16x96xf32>
    %187 = tpu.matmul %185, %186, %cst_75 {dimension_numbers = #tpu.dot_dimension_numbers<[1], [0], [0], [1], [0, 0, 1, 1], [], []>} : vector<16x32xf32>, vector<32x96xf32>, vector<16x96xf32> -> vector<16x96xf32>
    %c0_76 = arith.constant 0 : index
    %c0_77 = arith.constant 0 : index
    %188 = vector.load %arg14[%c0_76, %c0_77] : memref<1x96xf32, #tpu.memory_space<vmem>>, vector<1x96xf32>
    %189 = vector.broadcast %188 : vector<1x96xf32> to vector<16x96xf32>
    %190 = arith.addf %187, %189 : vector<16x96xf32>
    %191 = vector.extract_strided_slice %190 {offsets = [0, 0], sizes = [16, 32], strides = [1, 1]} : vector<16x96xf32> to vector<16x32xf32>
    %cst_78 = arith.constant 0.353553385 : f32
    %192 = vector.broadcast %cst_78 : f32 to vector<16x32xf32>
    %193 = arith.mulf %191, %192 : vector<16x32xf32>
    %194 = vector.shape_cast %193 : vector<16x32xf32> to vector<2x8x32xf32>
    %195 = vector.extract_strided_slice %190 {offsets = [0, 32], sizes = [16, 32], strides = [1, 1]} : vector<16x96xf32> to vector<16x32xf32>
    %196 = vector.shape_cast %195 : vector<16x32xf32> to vector<2x8x32xf32>
    %197 = vector.extract_strided_slice %190 {offsets = [0, 64], sizes = [16, 32], strides = [1, 1]} : vector<16x96xf32> to vector<16x32xf32>
    %198 = vector.shape_cast %197 : vector<16x32xf32> to vector<2x8x32xf32>
    %199 = vector.extract_strided_slice %194 {offsets = [0, 0, 0], sizes = [2, 8, 8], strides = [1, 1, 1]} : vector<2x8x32xf32> to vector<2x8x8xf32>
    %200 = vector.extract_strided_slice %196 {offsets = [0, 0, 0], sizes = [2, 8, 8], strides = [1, 1, 1]} : vector<2x8x32xf32> to vector<2x8x8xf32>
    "tpu.trace_start"() <{level = 10 : i32, message = "btd,bsd->bts"}> : () -> ()
    %cst_79 = arith.constant dense<0.000000e+00> : vector<2x8x8xf32>
    %201 = tpu.matmul %199, %200, %cst_79 {dimension_numbers = #tpu.dot_dimension_numbers<[2], [2], [1], [1], [0, 0, 0, 1, 1, 1], [0], [0]>} : vector<2x8x8xf32>, vector<2x8x8xf32>, vector<2x8x8xf32> -> vector<2x8x8xf32>
    %cst_80 = arith.constant -1.000000e+30 : f32
    "tpu.trace_stop"() : () -> ()
    %202 = vector.broadcast %cst_80 : f32 to vector<2x8x8xf32>
    %203 = arith.select %4, %202, %201 : vector<2x8x8xi1>, vector<2x8x8xf32>
    %cst_81 = arith.constant dense<0xFF800000> : vector<2x8xf32>
    %204 = vector.multi_reduction <maximumf>, %203, %cst_81 [2] : vector<2x8x8xf32> to vector<2x8xf32>
    %205 = vector.shape_cast %204 : vector<2x8xf32> to vector<2x8x1xf32>
    %206 = vector.broadcast %205 : vector<2x8x1xf32> to vector<2x8x8xf32>
    %207 = arith.subf %203, %206 : vector<2x8x8xf32>
    %208 = math.exp %207 : vector<2x8x8xf32>
    %cst_82 = arith.constant dense<0.000000e+00> : vector<2x8xf32>
    %209 = vector.multi_reduction <add>, %208, %cst_82 [2] : vector<2x8x8xf32> to vector<2x8xf32>
    %210 = vector.shape_cast %209 : vector<2x8xf32> to vector<2x8x1xf32>
    %211 = vector.broadcast %210 : vector<2x8x1xf32> to vector<2x8x8xf32>
    %212 = arith.divf %208, %211 : vector<2x8x8xf32>
    %213 = vector.extract_strided_slice %198 {offsets = [0, 0, 0], sizes = [2, 8, 8], strides = [1, 1, 1]} : vector<2x8x32xf32> to vector<2x8x8xf32>
    "tpu.trace_start"() <{level = 10 : i32, message = "bts,bsd->btd"}> : () -> ()
    %cst_83 = arith.constant dense<0.000000e+00> : vector<2x8x8xf32>
    %214 = tpu.matmul %212, %213, %cst_83 {dimension_numbers = #tpu.dot_dimension_numbers<[2], [1], [1], [2], [0, 0, 0, 1, 1, 2], [0], [0]>} : vector<2x8x8xf32>, vector<2x8x8xf32>, vector<2x8x8xf32> -> vector<2x8x8xf32>
    "tpu.trace_stop"() : () -> ()
    %215 = vector.extract_strided_slice %194 {offsets = [0, 0, 8], sizes = [2, 8, 8], strides = [1, 1, 1]} : vector<2x8x32xf32> to vector<2x8x8xf32>
    %216 = vector.extract_strided_slice %196 {offsets = [0, 0, 8], sizes = [2, 8, 8], strides = [1, 1, 1]} : vector<2x8x32xf32> to vector<2x8x8xf32>
    "tpu.trace_start"() <{level = 10 : i32, message = "btd,bsd->bts"}> : () -> ()
    %cst_84 = arith.constant dense<0.000000e+00> : vector<2x8x8xf32>
    %217 = tpu.matmul %215, %216, %cst_84 {dimension_numbers = #tpu.dot_dimension_numbers<[2], [2], [1], [1], [0, 0, 0, 1, 1, 1], [0], [0]>} : vector<2x8x8xf32>, vector<2x8x8xf32>, vector<2x8x8xf32> -> vector<2x8x8xf32>
    %cst_85 = arith.constant -1.000000e+30 : f32
    "tpu.trace_stop"() : () -> ()
    %218 = vector.broadcast %cst_85 : f32 to vector<2x8x8xf32>
    %219 = arith.select %4, %218, %217 : vector<2x8x8xi1>, vector<2x8x8xf32>
    %cst_86 = arith.constant dense<0xFF800000> : vector<2x8xf32>
    %220 = vector.multi_reduction <maximumf>, %219, %cst_86 [2] : vector<2x8x8xf32> to vector<2x8xf32>
    %221 = vector.shape_cast %220 : vector<2x8xf32> to vector<2x8x1xf32>
    %222 = vector.broadcast %221 : vector<2x8x1xf32> to vector<2x8x8xf32>
    %223 = arith.subf %219, %222 : vector<2x8x8xf32>
    %224 = math.exp %223 : vector<2x8x8xf32>
    %cst_87 = arith.constant dense<0.000000e+00> : vector<2x8xf32>
    %225 = vector.multi_reduction <add>, %224, %cst_87 [2] : vector<2x8x8xf32> to vector<2x8xf32>
    %226 = vector.shape_cast %225 : vector<2x8xf32> to vector<2x8x1xf32>
    %227 = vector.broadcast %226 : vector<2x8x1xf32> to vector<2x8x8xf32>
    %228 = arith.divf %224, %227 : vector<2x8x8xf32>
    %229 = vector.extract_strided_slice %198 {offsets = [0, 0, 8], sizes = [2, 8, 8], strides = [1, 1, 1]} : vector<2x8x32xf32> to vector<2x8x8xf32>
    "tpu.trace_start"() <{level = 10 : i32, message = "bts,bsd->btd"}> : () -> ()
    %cst_88 = arith.constant dense<0.000000e+00> : vector<2x8x8xf32>
    %230 = tpu.matmul %228, %229, %cst_88 {dimension_numbers = #tpu.dot_dimension_numbers<[2], [1], [1], [2], [0, 0, 0, 1, 1, 2], [0], [0]>} : vector<2x8x8xf32>, vector<2x8x8xf32>, vector<2x8x8xf32> -> vector<2x8x8xf32>
    "tpu.trace_stop"() : () -> ()
    %231 = vector.extract_strided_slice %194 {offsets = [0, 0, 16], sizes = [2, 8, 8], strides = [1, 1, 1]} : vector<2x8x32xf32> to vector<2x8x8xf32>
    %232 = vector.extract_strided_slice %196 {offsets = [0, 0, 16], sizes = [2, 8, 8], strides = [1, 1, 1]} : vector<2x8x32xf32> to vector<2x8x8xf32>
    "tpu.trace_start"() <{level = 10 : i32, message = "btd,bsd->bts"}> : () -> ()
    %cst_89 = arith.constant dense<0.000000e+00> : vector<2x8x8xf32>
    %233 = tpu.matmul %231, %232, %cst_89 {dimension_numbers = #tpu.dot_dimension_numbers<[2], [2], [1], [1], [0, 0, 0, 1, 1, 1], [0], [0]>} : vector<2x8x8xf32>, vector<2x8x8xf32>, vector<2x8x8xf32> -> vector<2x8x8xf32>
    %cst_90 = arith.constant -1.000000e+30 : f32
    "tpu.trace_stop"() : () -> ()
    %234 = vector.broadcast %cst_90 : f32 to vector<2x8x8xf32>
    %235 = arith.select %4, %234, %233 : vector<2x8x8xi1>, vector<2x8x8xf32>
    %cst_91 = arith.constant dense<0xFF800000> : vector<2x8xf32>
    %236 = vector.multi_reduction <maximumf>, %235, %cst_91 [2] : vector<2x8x8xf32> to vector<2x8xf32>
    %237 = vector.shape_cast %236 : vector<2x8xf32> to vector<2x8x1xf32>
    %238 = vector.broadcast %237 : vector<2x8x1xf32> to vector<2x8x8xf32>
    %239 = arith.subf %235, %238 : vector<2x8x8xf32>
    %240 = math.exp %239 : vector<2x8x8xf32>
    %cst_92 = arith.constant dense<0.000000e+00> : vector<2x8xf32>
    %241 = vector.multi_reduction <add>, %240, %cst_92 [2] : vector<2x8x8xf32> to vector<2x8xf32>
    %242 = vector.shape_cast %241 : vector<2x8xf32> to vector<2x8x1xf32>
    %243 = vector.broadcast %242 : vector<2x8x1xf32> to vector<2x8x8xf32>
    %244 = arith.divf %240, %243 : vector<2x8x8xf32>
    %245 = vector.extract_strided_slice %198 {offsets = [0, 0, 16], sizes = [2, 8, 8], strides = [1, 1, 1]} : vector<2x8x32xf32> to vector<2x8x8xf32>
    "tpu.trace_start"() <{level = 10 : i32, message = "bts,bsd->btd"}> : () -> ()
    %cst_93 = arith.constant dense<0.000000e+00> : vector<2x8x8xf32>
    %246 = tpu.matmul %244, %245, %cst_93 {dimension_numbers = #tpu.dot_dimension_numbers<[2], [1], [1], [2], [0, 0, 0, 1, 1, 2], [0], [0]>} : vector<2x8x8xf32>, vector<2x8x8xf32>, vector<2x8x8xf32> -> vector<2x8x8xf32>
    "tpu.trace_stop"() : () -> ()
    %247 = vector.extract_strided_slice %194 {offsets = [0, 0, 24], sizes = [2, 8, 8], strides = [1, 1, 1]} : vector<2x8x32xf32> to vector<2x8x8xf32>
    %248 = vector.extract_strided_slice %196 {offsets = [0, 0, 24], sizes = [2, 8, 8], strides = [1, 1, 1]} : vector<2x8x32xf32> to vector<2x8x8xf32>
    "tpu.trace_start"() <{level = 10 : i32, message = "btd,bsd->bts"}> : () -> ()
    %cst_94 = arith.constant dense<0.000000e+00> : vector<2x8x8xf32>
    %249 = tpu.matmul %247, %248, %cst_94 {dimension_numbers = #tpu.dot_dimension_numbers<[2], [2], [1], [1], [0, 0, 0, 1, 1, 1], [0], [0]>} : vector<2x8x8xf32>, vector<2x8x8xf32>, vector<2x8x8xf32> -> vector<2x8x8xf32>
    %cst_95 = arith.constant -1.000000e+30 : f32
    "tpu.trace_stop"() : () -> ()
    %250 = vector.broadcast %cst_95 : f32 to vector<2x8x8xf32>
    %251 = arith.select %4, %250, %249 : vector<2x8x8xi1>, vector<2x8x8xf32>
    %cst_96 = arith.constant dense<0xFF800000> : vector<2x8xf32>
    %252 = vector.multi_reduction <maximumf>, %251, %cst_96 [2] : vector<2x8x8xf32> to vector<2x8xf32>
    %253 = vector.shape_cast %252 : vector<2x8xf32> to vector<2x8x1xf32>
    %254 = vector.broadcast %253 : vector<2x8x1xf32> to vector<2x8x8xf32>
    %255 = arith.subf %251, %254 : vector<2x8x8xf32>
    %256 = math.exp %255 : vector<2x8x8xf32>
    %cst_97 = arith.constant dense<0.000000e+00> : vector<2x8xf32>
    %257 = vector.multi_reduction <add>, %256, %cst_97 [2] : vector<2x8x8xf32> to vector<2x8xf32>
    %258 = vector.shape_cast %257 : vector<2x8xf32> to vector<2x8x1xf32>
    %259 = vector.broadcast %258 : vector<2x8x1xf32> to vector<2x8x8xf32>
    %260 = arith.divf %256, %259 : vector<2x8x8xf32>
    %261 = vector.extract_strided_slice %198 {offsets = [0, 0, 24], sizes = [2, 8, 8], strides = [1, 1, 1]} : vector<2x8x32xf32> to vector<2x8x8xf32>
    "tpu.trace_start"() <{level = 10 : i32, message = "bts,bsd->btd"}> : () -> ()
    %cst_98 = arith.constant dense<0.000000e+00> : vector<2x8x8xf32>
    %262 = tpu.matmul %260, %261, %cst_98 {dimension_numbers = #tpu.dot_dimension_numbers<[2], [1], [1], [2], [0, 0, 0, 1, 1, 2], [0], [0]>} : vector<2x8x8xf32>, vector<2x8x8xf32>, vector<2x8x8xf32> -> vector<2x8x8xf32>
    "tpu.trace_stop"() : () -> ()
    %263 = tpu.concatenate %214, %230, %246, %262 in 2 : vector<2x8x8xf32>, vector<2x8x8xf32>, vector<2x8x8xf32>, vector<2x8x8xf32> -> vector<2x8x32xf32>
    %264 = vector.shape_cast %263 : vector<2x8x32xf32> to vector<16x32xf32>
    %c0_99 = arith.constant 0 : index
    %c0_100 = arith.constant 0 : index
    %265 = vector.load %arg15[%c0_99, %c0_100] : memref<32x32xf32, #tpu.memory_space<vmem>>, vector<32x32xf32>
    %cst_101 = arith.constant dense<0.000000e+00> : vector<16x32xf32>
    %266 = tpu.matmul %264, %265, %cst_101 {dimension_numbers = #tpu.dot_dimension_numbers<[1], [0], [0], [1], [0, 0, 1, 1], [], []>} : vector<16x32xf32>, vector<32x32xf32>, vector<16x32xf32> -> vector<16x32xf32>
    %c0_102 = arith.constant 0 : index
    %c0_103 = arith.constant 0 : index
    %267 = vector.load %arg16[%c0_102, %c0_103] : memref<1x32xf32, #tpu.memory_space<vmem>>, vector<1x32xf32>
    %268 = vector.broadcast %267 : vector<1x32xf32> to vector<16x32xf32>
    %269 = arith.addf %266, %268 : vector<16x32xf32>
    %270 = arith.addf %161, %269 : vector<16x32xf32>
    %c0_104 = arith.constant 0 : index
    %c0_105 = arith.constant 0 : index
    %271 = vector.load %arg19[%c0_104, %c0_105] : memref<1x32xf32, #tpu.memory_space<vmem>>, vector<1x32xf32>
    %c0_106 = arith.constant 0 : index
    %c0_107 = arith.constant 0 : index
    %272 = vector.load %arg20[%c0_106, %c0_107] : memref<1x32xf32, #tpu.memory_space<vmem>>, vector<1x32xf32>
    %cst_108 = arith.constant dense<0.000000e+00> : vector<16xf32>
    %273 = vector.multi_reduction <add>, %270, %cst_108 [1] : vector<16x32xf32> to vector<16xf32>
    %274 = vector.shape_cast %273 : vector<16xf32> to vector<16x1xf32>
    %cst_109 = arith.constant 3.200000e+01 : f32
    %275 = vector.broadcast %cst_109 : f32 to vector<16x1xf32>
    %276 = arith.divf %274, %275 : vector<16x1xf32>
    %277 = vector.broadcast %276 : vector<16x1xf32> to vector<16x32xf32>
    %278 = arith.subf %270, %277 : vector<16x32xf32>
    %279 = arith.mulf %278, %278 : vector<16x32xf32>
    %cst_110 = arith.constant dense<0.000000e+00> : vector<16xf32>
    %280 = vector.multi_reduction <add>, %279, %cst_110 [1] : vector<16x32xf32> to vector<16xf32>
    %281 = vector.shape_cast %280 : vector<16xf32> to vector<16x1xf32>
    %cst_111 = arith.constant 3.200000e+01 : f32
    %282 = vector.broadcast %cst_111 : f32 to vector<16x1xf32>
    %283 = arith.divf %281, %282 : vector<16x1xf32>
    %284 = vector.broadcast %276 : vector<16x1xf32> to vector<16x32xf32>
    %285 = arith.subf %270, %284 : vector<16x32xf32>
    %cst_112 = arith.constant 9.99999974E-6 : f32
    %286 = vector.broadcast %cst_112 : f32 to vector<16x1xf32>
    %287 = arith.addf %283, %286 : vector<16x1xf32>
    %288 = math.rsqrt %287 : vector<16x1xf32>
    %289 = vector.broadcast %288 : vector<16x1xf32> to vector<16x32xf32>
    %290 = arith.mulf %285, %289 : vector<16x32xf32>
    %291 = vector.broadcast %271 : vector<1x32xf32> to vector<16x32xf32>
    %292 = arith.mulf %290, %291 : vector<16x32xf32>
    %293 = vector.broadcast %272 : vector<1x32xf32> to vector<16x32xf32>
    %294 = arith.addf %292, %293 : vector<16x32xf32>
    %c0_113 = arith.constant 0 : index
    %c0_114 = arith.constant 0 : index
    %295 = vector.load %arg21[%c0_113, %c0_114] : memref<32x128xf32, #tpu.memory_space<vmem>>, vector<32x128xf32>
    %cst_115 = arith.constant dense<0.000000e+00> : vector<16x128xf32>
    %296 = tpu.matmul %294, %295, %cst_115 {dimension_numbers = #tpu.dot_dimension_numbers<[1], [0], [0], [1], [0, 0, 1, 1], [], []>} : vector<16x32xf32>, vector<32x128xf32>, vector<16x128xf32> -> vector<16x128xf32>
    %c0_116 = arith.constant 0 : index
    %c0_117 = arith.constant 0 : index
    %297 = vector.load %arg22[%c0_116, %c0_117] : memref<1x128xf32, #tpu.memory_space<vmem>>, vector<1x128xf32>
    %298 = vector.broadcast %297 : vector<1x128xf32> to vector<16x128xf32>
    %299 = arith.addf %296, %298 : vector<16x128xf32>
    %cst_118 = arith.constant 5.000000e-01 : f32
    %300 = vector.broadcast %cst_118 : f32 to vector<16x128xf32>
    %301 = arith.mulf %300, %299 : vector<16x128xf32>
    %cst_119 = arith.constant 4.471500e-02 : f32
    %302 = vector.broadcast %cst_119 : f32 to vector<16x128xf32>
    %303 = arith.mulf %302, %299 : vector<16x128xf32>
    %304 = arith.mulf %303, %299 : vector<16x128xf32>
    %305 = arith.mulf %304, %299 : vector<16x128xf32>
    %306 = arith.addf %299, %305 : vector<16x128xf32>
    %cst_120 = arith.constant 0.797884583 : f32
    %307 = vector.broadcast %cst_120 : f32 to vector<16x128xf32>
    %308 = arith.mulf %307, %306 : vector<16x128xf32>
    %309 = math.tanh %308 : vector<16x128xf32>
    %cst_121 = arith.constant 1.000000e+00 : f32
    %310 = vector.broadcast %cst_121 : f32 to vector<16x128xf32>
    %311 = arith.addf %310, %309 : vector<16x128xf32>
    %312 = arith.mulf %301, %311 : vector<16x128xf32>
    %c0_122 = arith.constant 0 : index
    %c0_123 = arith.constant 0 : index
    %313 = vector.load %arg23[%c0_122, %c0_123] : memref<128x32xf32, #tpu.memory_space<vmem>>, vector<128x32xf32>
    %cst_124 = arith.constant dense<0.000000e+00> : vector<16x32xf32>
    %314 = tpu.matmul %312, %313, %cst_124 {dimension_numbers = #tpu.dot_dimension_numbers<[1], [0], [0], [1], [0, 0, 1, 1], [], []>} : vector<16x128xf32>, vector<128x32xf32>, vector<16x32xf32> -> vector<16x32xf32>
    %c0_125 = arith.constant 0 : index
    %c0_126 = arith.constant 0 : index
    %315 = vector.load %arg24[%c0_125, %c0_126] : memref<1x32xf32, #tpu.memory_space<vmem>>, vector<1x32xf32>
    %316 = vector.broadcast %315 : vector<1x32xf32> to vector<16x32xf32>
    %317 = arith.addf %314, %316 : vector<16x32xf32>
    %318 = arith.addf %270, %317 : vector<16x32xf32>
    %c0_127 = arith.constant 0 : index
    %c0_128 = arith.constant 0 : index
    %319 = vector.load %arg25[%c0_127, %c0_128] : memref<1x32xf32, #tpu.memory_space<vmem>>, vector<1x32xf32>
    %c0_129 = arith.constant 0 : index
    %c0_130 = arith.constant 0 : index
    %320 = vector.load %arg26[%c0_129, %c0_130] : memref<1x32xf32, #tpu.memory_space<vmem>>, vector<1x32xf32>
    %cst_131 = arith.constant dense<0.000000e+00> : vector<16xf32>
    %321 = vector.multi_reduction <add>, %318, %cst_131 [1] : vector<16x32xf32> to vector<16xf32>
    %322 = vector.shape_cast %321 : vector<16xf32> to vector<16x1xf32>
    %cst_132 = arith.constant 3.200000e+01 : f32
    %323 = vector.broadcast %cst_132 : f32 to vector<16x1xf32>
    %324 = arith.divf %322, %323 : vector<16x1xf32>
    %325 = vector.broadcast %324 : vector<16x1xf32> to vector<16x32xf32>
    %326 = arith.subf %318, %325 : vector<16x32xf32>
    %327 = arith.mulf %326, %326 : vector<16x32xf32>
    %cst_133 = arith.constant dense<0.000000e+00> : vector<16xf32>
    %328 = vector.multi_reduction <add>, %327, %cst_133 [1] : vector<16x32xf32> to vector<16xf32>
    %329 = vector.shape_cast %328 : vector<16xf32> to vector<16x1xf32>
    %cst_134 = arith.constant 3.200000e+01 : f32
    %330 = vector.broadcast %cst_134 : f32 to vector<16x1xf32>
    %331 = arith.divf %329, %330 : vector<16x1xf32>
    %332 = vector.broadcast %324 : vector<16x1xf32> to vector<16x32xf32>
    %333 = arith.subf %318, %332 : vector<16x32xf32>
    %cst_135 = arith.constant 9.99999974E-6 : f32
    %334 = vector.broadcast %cst_135 : f32 to vector<16x1xf32>
    %335 = arith.addf %331, %334 : vector<16x1xf32>
    %336 = math.rsqrt %335 : vector<16x1xf32>
    %337 = vector.broadcast %336 : vector<16x1xf32> to vector<16x32xf32>
    %338 = arith.mulf %333, %337 : vector<16x32xf32>
    %339 = vector.broadcast %319 : vector<1x32xf32> to vector<16x32xf32>
    %340 = arith.mulf %338, %339 : vector<16x32xf32>
    %341 = vector.broadcast %320 : vector<1x32xf32> to vector<16x32xf32>
    %342 = arith.addf %340, %341 : vector<16x32xf32>
    %c0_136 = arith.constant 0 : index
    %c0_137 = arith.constant 0 : index
    %343 = vector.load %arg27[%c0_136, %c0_137] : memref<32x128xf32, #tpu.memory_space<vmem>>, vector<32x128xf32>
    %cst_138 = arith.constant dense<0.000000e+00> : vector<16x128xf32>
    %344 = tpu.matmul %342, %343, %cst_138 {dimension_numbers = #tpu.dot_dimension_numbers<[1], [0], [0], [1], [0, 0, 1, 1], [], []>} : vector<16x32xf32>, vector<32x128xf32>, vector<16x128xf32> -> vector<16x128xf32>
    %c0_139 = arith.constant 0 : index
    %c0_140 = arith.constant 0 : index
    %345 = vector.load %arg28[%c0_139, %c0_140] : memref<1x128xf32, #tpu.memory_space<vmem>>, vector<1x128xf32>
    %346 = vector.broadcast %345 : vector<1x128xf32> to vector<16x128xf32>
    %347 = arith.addf %344, %346 : vector<16x128xf32>
    %348 = vector.shape_cast %347 : vector<16x128xf32> to vector<2x8x128xf32>
    %c0_141 = arith.constant 0 : index
    %c0_142 = arith.constant 0 : index
    %c0_143 = arith.constant 0 : index
    %349 = vector.load %arg29[%c0_141, %c0_142, %c0_143] : memref<2x8x128xf32, #tpu.memory_space<vmem>>, vector<2x8x128xf32>
    tpu.vector_store %arg29[%c0_141, %c0_142, %c0_143], %348 {strides = array<i32>} : memref<2x8x128xf32, #tpu.memory_space<vmem>>, vector<2x8x128xf32>,
    return
  }
}

</mosaic_0001>

<bundles_post_ra>
// kernel: gpt_forward.1
= control target key start
LH: loop header
LB: loop body
LE: loop exit
PB: predicated region body
PF: predicated region fallthrough
CT: control target
= control target key end

     0   :  { %s4819_s6 = smov 1   ;;  %s4820_s10 = smov 2   ;;  %s5553_s0 = inlined_call_operand.smem [shape: u32[30], index: -1, kind: input, shape index: {}] }
   0x1   :  { %s4874_s5 = sld [smem:[%s5553_s0]]   ;;  %s4821_s14 = smov 3  }
   0x2   :  { %s4879_s9 = sld [smem:[%s5553_s0 + %s4819_s6]]   ;;  %s4822_s18 = smov 4  }
   0x3   :  { %s4884_s13 = sld [smem:[%s5553_s0 + %s4820_s10]]   ;;  %s4823_s22 = smov 5  }
   0x4   :  { %s4889_s17 = sld [smem:[%s5553_s0 + %s4821_s14]]   ;;  %s4824_s26 = smov 6  }
   0x5   :  { %s4894_s21 = sld [smem:[%s5553_s0 + %s4822_s18]]   ;;  %s4825_s30 = smov 7  }
   0x6   :  { %s4899_s25 = sld [smem:[%s5553_s0 + %s4823_s22]]   ;;  %s4826_s4 = smov 8  }
   0x7   :  { %s4904_s29 = sld [smem:[%s5553_s0 + %s4824_s26]]   ;;  %s4827_s10 = smov 9  }
   0x8   :  { %s4909_s3 = sld [smem:[%s5553_s0 + %s4825_s30]]   ;;  %s4828_s15 = smov 10  }
   0x9   :  { %s4914_s8 = sld [smem:[%s5553_s0 + %s4826_s4]]   ;;  %s4829_s20 = smov 11  }
   0xa   :  { %s4919_s14 = sld [smem:[%s5553_s0 + %s4827_s10]]   ;;  %s4830_s26 = smov 12  }
   0xb   :  { %s4924_s19 = sld [smem:[%s5553_s0 + %s4828_s15]]   ;;  %s4831_s1 = smov 13  }
   0xc   :  { %s4929_s24 = sld [smem:[%s5553_s0 + %s4829_s20]]   ;;  %s4832_s7 = smov 14  }
   0xd   :  { %s4934_s30 = sld [smem:[%s5553_s0 + %s4830_s26]]   ;;  %s4833_s15 = smov 15  }
   0xe   :  { %s4939_s6 = sld [smem:[%s5553_s0 + %s4831_s1]]   ;;  %s4834_s22 = smov 16  }
   0xf   :  { %s4944_s12 = sld [smem:[%s5553_s0 + %s4832_s7]]   ;;  %s4835_s28 = smov 17  }
  0x10   :  { %s4949_s20 = sld [smem:[%s5553_s0 + %s4833_s15]]   ;;  %s4836_s7 = smov 18  }
  0x11   :  { %s4954_s27 = sld [smem:[%s5553_s0 + %s4834_s22]]   ;;  %s4837_s15 = smov 19  }
  0x12   :  { %s4959_s4 = sld [smem:[%s5553_s0 + %s4835_s28]]   ;;  %s4838_s22 = smov 20  }
  0x13   :  { %s4839_s28 = smov 21  }
  0x15   :  { %5557 = sst [smem:[#allocation5_spill]] %s4944_s12 }
  0x16   :  { %5558 = sst [smem:[#allocation6_spill]] %s4949_s20 }
  0x17   :  { %5559 = sst [smem:[#allocation7_spill]] %s4954_s27 }
  0x18   :  { %5560 = sst [smem:[#allocation8_spill]] %s4959_s4 }
  0x19   :  { %s4964_s12 = sld [smem:[%s5553_s0 + %s4836_s7]]   ;;  %s4840_s7 = smov 22  }
  0x1a   :  { %s4969_s20 = sld [smem:[%s5553_s0 + %s4837_s15]]   ;;  %s4841_s15 = smov 23  }
  0x1b   :  { %s4974_s27 = sld [smem:[%s5553_s0 + %s4838_s22]]   ;;  %s4842_s22 = smov 24  }
  0x1c   :  { %s4979_s4 = sld [smem:[%s5553_s0 + %s4839_s28]]   ;;  %s4843_s28 = smov 25  }
  0x1f   :  { %5561 = sst [smem:[#allocation9_spill]] %s4964_s12 }
  0x20   :  { %5562 = sst [smem:[#allocation10_spill]] %s4969_s20 }
  0x21   :  { %5563 = sst [smem:[#allocation11_spill]] %s4974_s27 }
  0x22   :  { %5564 = sst [smem:[#allocation12_spill]] %s4979_s4 }
  0x23   :  { %s4984_s12 = sld [smem:[%s5553_s0 + %s4840_s7]]   ;;  %s4844_s7 = smov 26  }
  0x24   :  { %s4989_s20 = sld [smem:[%s5553_s0 + %s4841_s15]]   ;;  %s4845_s15 = smov 27  }
  0x25   :  { %s4994_s27 = sld [smem:[%s5553_s0 + %s4842_s22]]   ;;  %s4846_s22 = smov 28  }
  0x26   :  { %s4999_s4 = sld [smem:[%s5553_s0 + %s4843_s28]]   ;;  %s4847_s28 = smov 29  }
  0x29   :  { %5565 = sst [smem:[#allocation13_spill]] %s4984_s12 }
  0x2a   :  { %5566 = sst [smem:[#allocation14_spill]] %s4989_s20 }
  0x2b   :  { %5567 = sst [smem:[#allocation15_spill]] %s4994_s27 }
  0x2c   :  { %5568 = sst [smem:[#allocation16_spill]] %s4999_s4 }
  0x2d   :  { %s5004_s12 = sld [smem:[%s5553_s0 + %s4844_s7]]  }
  0x2e   :  { %s5009_s20 = sld [smem:[%s5553_s0 + %s4845_s15]]  }
  0x2f   :  { %s5014_s27 = sld [smem:[%s5553_s0 + %s4846_s22]]  }
  0x30   :  { %s5019_s4 = sld [smem:[%s5553_s0 + %s4847_s28]]  }
  0x31   :  { %v5022_v0 = vld [vmem:[%s4874_s5] sm:$0xff]  ;;  %vm132_vm0 = vcmask 261120   ;;  %v5025_v1 = vld [vmem:[%s4874_s5 + $0x8] sm:$0xff] }
  0x32   :  { %64 = vsyncpa [#allocation3], 0  ;;  %v133_v2 = vsel %vm132_vm0, %v5022_v0, 0.0  ;;  %v136_v3 = vsel %vm132_vm0, %v5025_v1, 0.0  ;;  %v176_v14 = vld [vmem:[%s4879_s9] sm:$0xff]  ;;  %v177_v15 = vld [vmem:[%s4879_s9 + $0x8] sm:$0xff]  ;;  %v125_v46 = vlaneseq }
  0x33   :  { %134 = vadd.xlane.f32.xlu0 %v133_v2  ;;  %v178_v16 = vld [vmem:[%s4879_s9 + $0x10] sm:$0xff]  ;;  %v4536_v17 = vpack.c.bf16 %v177_v15, %v176_v14  ;;  %v179_v18 = vld [vmem:[%s4879_s9 + $0x18] sm:$0xff]  ;;  %v4006_v27 = vld [vmem:[%s4899_s25] ss:$0 sm:$0xff]  ;;  %v4848_v36 = vmov 0.0   ;;  %vm4849_vm1 = vmmov 0  }
  0x34   :  { %v4540_v19 = vpack.c.bf16 %v179_v18, %v178_v16  ;;  %v4007_v29 = vld [vmem:[%s4904_s29] ss:$0 sm:$0xff]  ;;  %4260 = vmatprep.subr.mxu0 %v4848_v36  ;;  %4262 = vmatprep.mubr.msk.f32.mxu0 %vm4849_vm1, %v4848_v36  ;;  %s4850_s0 = smov 96   ;;  %vm273_vm2 = vcmask 64512   ;;  %v126_v47 = vshrl.u32 %v125_v46, 7  ;;  %v128_v48 = vand.u32 127, %v125_v46 }
  0x35   :  { %4537 = vmatprep.subr.bf16.mxu1 %v4536_v17  ;;  %v4008_v37 = vld [vmem:[%s4884_s13] ss:$0 sm:$0xff]  ;;  %s4851_s5 = smov 64   ;;  %s4852_s9 = smov 88   ;;  %vm1628_vm4 = vcmask 195584   ;;  %vm1625_vm5 = vcmask 130048  }
  0x36   :  { %4539 = vmatpush3.bf16.msra.mxu1 %v4536_v17  ;;  %vm5076_vm3 = vcmp.gt.s32.totalorder %v128_v48, %v126_v47  ;;  %s4853_s13 = smov 120   ;;  %s4854_s25 = smov 56  }
  0x37   :  { %137 = vadd.xlane.f32.xlu0 %v136_v3  ;;  %4541 = vmatprep.subr.bf16.mxu1 %v4540_v19  ;;  %s4855_s29 = smov 80   ;;  %s4856_s7 = smov 112  }
  0x38   :  { %s4857_s10 = smov 48   ;;  %s4858_s11 = smov 72  }
  0x39   :  { %s4859_s15 = smov 104   ;;  %s4860_s16 = smov 40  }
  0x3a   :  { %4543 = vmatpush3.bf16.msra.mxu1 %v4540_v19  ;;  %s4861_s18 = smov 8   ;;  %s4862_s22 = smov 16  }
  0x3b   :  { %4240 = vmatprep.subr.mxu1 %v4848_v36  ;;  %s4863_s23 = smov 24   ;;  %s5580_s26 = sld [smem:[#allocation13_spill]] }
  0x3c   :  { %s5581_s28 = sld [smem:[#allocation15_spill]]  ;;  %s5582_s1 = sld [smem:[#allocation16_spill]] }
  0xc0   :  { %v135_v4 = vpop.xlane.xlu0 %134 }
  0xc1   :  { %v140_v5 = vmul.f32 0.03125, %v135_v4 }
  0xc3   :  { %v142_v6 = vsub.f32 %v5022_v0, %v140_v5 }
  0xc4   :  { %v138_v7 = vpop.xlane.xlu0 %137 }
  0xc5   :  { %v141_v8 = vmul.f32 0.03125, %v138_v7  ;;  %v144_v9 = vmul.f32 %v142_v6, %v142_v6 }
  0xc7   :  { %v143_v10 = vsub.f32 %v5025_v1, %v141_v8  ;;  %v146_v11 = vsel %vm132_vm0, %v144_v9, 0.0 }
  0xc8   :  { %147 = vadd.xlane.f32.xlu1 %v146_v11 }
  0xc9   :  { %v145_v12 = vmul.f32 %v143_v10, %v143_v10 }
  0xcb   :  { %v149_v13 = vsel %vm132_vm0, %v145_v12, 0.0 }
  0xcc   :  { %150 = vadd.xlane.f32.xlu1 %v149_v13 }
 0x155   :  { %v148_v20 = vpop.xlane.xlu1 %147 }
 0x156   :  { %v152_v21 = vmul.f32 0.03125, %v148_v20 }
 0x158   :  { %v154_v22 = vadd.f32 1e-05, %v152_v21 }
 0x159   :  { %v151_v23 = vpop.xlane.xlu1 %150 }
 0x15a   :  { %4703 = vrsqrt.f32 %v154_v22  ;;  %v153_v24 = vmul.f32 0.03125, %v151_v23 }
 0x15c   :  { %v155_v25 = vadd.f32 1e-05, %v153_v24 }
 0x15e   :  { %4705 = vrsqrt.f32 %v155_v25 }
 0x164   :  { %v4704_v26 = vpop.eup %4703 }
 0x165   :  { %v158_v28 = vmul.f32 %v4704_v26, %v142_v6 }
 0x167   :  { %v166_v30 = vmul.f32 %v4006_v27, %v158_v28 }
 0x168   :  { %v4706_v31 = vpop.eup %4705 }
 0x169   :  { %v159_v32 = vmul.f32 %v4706_v31, %v143_v10  ;;  %v174_v33 = vadd.f32 %v4007_v29, %v166_v30 }
 0x16b   :  { %v167_v34 = vmul.f32 %v4006_v27, %v159_v32  ;;  %4237 = vmatprep.mubr.msk.f32.mxu1 %vm132_vm0, %v174_v33 }
 0x16d   :  { %v175_v35 = vadd.f32 %v4007_v29, %v167_v34 }
 0x16f   :  { %4238 = vmatmul.mubr.msk.f32.vlgmr.msra.gmra.mrb[0].mxu1 %vm132_vm0, %v175_v35 }
 0x170   :  { %4242 = vmatprep.mubr.msk.f32.mxu1 %vm4849_vm1, %v4848_v36 }
 0x242   :  { %v4239_v38 = vpop.f32.mrb[0].mxu1 }
 0x243   :  { %v5050_v39 = vadd.f32 %v4239_v38, %v4008_v37  ;;  %v259_v40 = vpop.f32.mrb[1].mxu1 }
 0x244   :  { %v5052_v41 = vadd.f32 %v4008_v37, %v259_v40 }
 0x245   :  { %350 = vrot.lane.b32.xlu1 %v5050_v39, %s4850_s0  ;;  %v5069_v45 = vmul.f32 0.35355338, %v5050_v39 }
 0x246   :  { %271 = vrot.lane.b32.xlu0 %v5052_v41, %s4850_s0  ;;  %v5060_v43 = vmul.f32 0.35355338, %v5052_v41 }
 0x2b7   :  { %v351_v44 = vpop.permute.xlu1 %350 }
 0x2b8   :  { %v272_v42 = vpop.permute.xlu0 %271 }
 0x2b9   :  { %4241 = vmatpush3.xpose.msk.msra.mxu1 %vm273_vm2, %v272_v42 }
 0x2ba   :  { %4245 = vmatprep.subr.mxu1 %v4848_v36 }
 0x2bc   :  { %4243 = vmatmul.mubr.msk.f32.vlgmr.msra.gmra.mrb[2].mxu1 %vm273_vm2, %v5060_v43 }
 0x2bd   :  { %4246 = vmatpush3.xpose.msk.msra.mxu1 %vm273_vm2, %v351_v44  ;;  %4247 = vmatprep.mubr.msk.f32.mxu1 %vm4849_vm1, %v4848_v36 }
 0x2be   :  { %4250 = vmatprep.subr.mxu1 %v4848_v36 }
 0x2c0   :  { %4248 = vmatmul.mubr.msk.f32.vlgmr.msra.gmra.mrb[4].mxu1 %vm273_vm2, %v5069_v45 }
 0x2c1   :  { %4252 = vmatprep.mubr.msk.f32.mxu1 %vm4849_vm1, %v4848_v36 }
 0x38f   :  { %v345_v50 = vpop.f32.mrb[2].mxu1 }
 0x390   :  { %v427_v51 = vsel %vm5076_vm3, -1e+30, %v345_v50  ;;  %v4244_v52 = vpop.f32.mrb[3].mxu1 }
 0x391   :  { %v429_v53 = vsel %vm273_vm2, %v427_v51, -inf }
 0x392   :  { %430 = vmax.xlane.f32.xlu1 %v429_v53 }
 0x393   :  { %v423_v54 = vpop.f32.mrb[4].mxu1 }
 0x394   :  { %v428_v55 = vsel %vm5076_vm3, -1e+30, %v423_v54  ;;  %v4249_v56 = vpop.f32.mrb[5].mxu1 }
 0x395   :  { %v432_v57 = vsel %vm273_vm2, %v428_v55, -inf }
 0x396   :  { %433 = vmax.xlane.f32.xlu0 %v432_v57 }
 0x3a3   :  { %527 = vrot.lane.b32.xlu1 %v5050_v39, %s4851_s5 }
 0x3a7   :  { %605 = vrot.lane.b32.xlu1 %v5052_v41, %s4852_s9 }
 0x3ab   :  { %683 = vrot.lane.b32.xlu1 %v5050_v39, %s4852_s9 }
 0x41f   :  { %v431_v58 = vpop.xlane.xlu1 %430 }
 0x420   :  { %v435_v59 = vsub.f32 %v427_v51, %v431_v58 }
 0x422   :  { %v437_v60 = vmul.f32 1.442695, %v435_v59 }
 0x423   :  { %v528_v61 = vpop.permute.xlu1 %527  ;;  %v434_v62 = vpop.xlane.xlu0 %433 }
 0x424   :  { %4707 = vpow2.f32 %v437_v60  ;;  %v436_v63 = vsub.f32 %v428_v55, %v434_v62 }
 0x426   :  { %v439_v2 = vmul.f32 1.442695, %v436_v63 }
 0x427   :  { %v606_v3 = vpop.permute.xlu1 %605 }
 0x428   :  { %4709 = vpow2.f32 %v439_v2  ;;  %4261 = vmatpush3.xpose.msk.msra.mxu0 %vm273_vm2, %v606_v3 }
 0x429   :  { %4270 = vmatprep.subr.mxu0 %v4848_v36 }
 0x42b   :  { %v684_v8 = vpop.permute.xlu1 %683 }
 0x42e   :  { %v4708_v4 = vpop.eup %4707 }
 0x42f   :  { %v441_v5 = vsel %vm273_vm2, %v4708_v4, 0.0 }
 0x430   :  { %442 = vadd.xlane.f32.xlu0 %v441_v5 }
 0x432   :  { %v4710_v6 = vpop.eup %4709 }
 0x433   :  { %v444_v7 = vsel %vm273_vm2, %v4710_v6, 0.0 }
 0x434   :  { %445 = vadd.xlane.f32.xlu1 %v444_v7 }
 0x445   :  { %681 = vrot.lane.b32.xlu1 %v5069_v45, %s4853_s13 }
 0x446   :  { %451 = vrot.lane.b32.xlu0 %v5052_v41, %s4851_s5 }
 0x44a   :  { %603 = vrot.lane.b32.xlu0 %v5060_v43, %s4853_s13 }
 0x4bd   :  { %v443_v9 = vpop.xlane.xlu0 %442 }
 0x4be   :  { %4711 = vrcp.f32 %v443_v9 }
 0x4c1   :  { %v446_v10 = vpop.xlane.xlu1 %445  ;;  %v452_v11 = vpop.permute.xlu0 %451 }
 0x4c2   :  { %4713 = vrcp.f32 %v446_v10  ;;  %4251 = vmatpush3.msra.mxu1 %v452_v11 }
 0x4c3   :  { %4255 = vmatprep.subr.mxu1 %v4848_v36 }
 0x4c5   :  { %v604_v12 = vpop.permute.xlu0 %603  ;;  %v682_v17 = vpop.permute.xlu1 %681 }
 0x4c6   :  { %4263 = vmatmul.mubr.msk.f32.vlgmr.msra.gmra.mrb[0].mxu0 %vm273_vm2, %v604_v12 }
 0x4c7   :  { %4272 = vmatprep.mubr.msk.f32.mxu0 %vm4849_vm1, %v4848_v36 }
 0x4c8   :  { %v4712_v13 = vpop.eup %4711 }
 0x4c9   :  { %v448_v14 = vmul.f32 %v4712_v13, %v4708_v4 }
 0x4cb   :  { %4253 = vmatmul.mubr.msk.f32.vlgmr.msra.gmra.mrb[6].mxu1 %vm273_vm2, %v448_v14 }
 0x4cc   :  { %v4714_v15 = vpop.eup %4713  ;;  %4256 = vmatpush3.msra.mxu1 %v528_v61  ;;  %4257 = vmatprep.mubr.msk.f32.mxu1 %vm4849_vm1, %v4848_v36 }
 0x4cd   :  { %v450_v16 = vmul.f32 %v4714_v15, %v4710_v6  ;;  %4265 = vmatprep.subr.mxu1 %v4848_v36 }
 0x4cf   :  { %4258 = vmatmul.mubr.msk.f32.vlgmr.msra.gmra.mrb[8].mxu1 %vm273_vm2, %v450_v16 }
 0x4d0   :  { %4267 = vmatprep.mubr.msk.f32.mxu1 %vm4849_vm1, %v4848_v36 }
 0x4d3   :  { %4266 = vmatpush3.xpose.msk.msra.mxu1 %vm273_vm2, %v684_v8 }
 0x4d4   :  { %4275 = vmatprep.subr.mxu1 %v4848_v36 }
 0x4d6   :  { %4268 = vmatmul.mubr.msk.f32.vlgmr.msra.gmra.mrb[10].mxu1 %vm273_vm2, %v682_v17 }
 0x4d7   :  { %4277 = vmatprep.mubr.msk.f32.mxu1 %vm4849_vm1, %v4848_v36 }
 0x599   :  { %v677_v18 = vpop.f32.mrb[0].mxu0 }
 0x59a   :  { %v759_v19 = vsel %vm5076_vm3, -1e+30, %v677_v18  ;;  %v4264_v20 = vpop.f32.mrb[1].mxu0 }
 0x59b   :  { %v761_v21 = vsel %vm273_vm2, %v759_v19, -inf }
 0x59c   :  { %762 = vmax.xlane.f32.xlu0 %v761_v21 }
 0x59e   :  { %v5121_v22 = vpop.f32.mrb[6].mxu1 }
 0x59f   :  { %v4254_v23 = vpop.f32.mrb[7].mxu1 }
 0x5a2   :  { %v5123_v24 = vpop.f32.mrb[8].mxu1 }
 0x5a3   :  { %v4259_v25 = vpop.f32.mrb[9].mxu1 }
 0x5a9   :  { %v755_v26 = vpop.f32.mrb[10].mxu1 }
 0x5aa   :  { %v760_v27 = vsel %vm5076_vm3, -1e+30, %v755_v26  ;;  %v4269_v28 = vpop.f32.mrb[11].mxu1 }
 0x5ab   :  { %v764_v29 = vsel %vm273_vm2, %v760_v27, -inf }
 0x5ac   :  { %765 = vmax.xlane.f32.xlu1 %v764_v29 }
 0x5bd   :  { %859 = vrot.lane.b32.xlu1 %v5050_v39, %s4854_s25 }
 0x5c1   :  { %937 = vrot.lane.b32.xlu1 %v5052_v41, %s4855_s29 }
 0x5c5   :  { %1015 = vrot.lane.b32.xlu1 %v5050_v39, %s4855_s29 }
 0x5c9   :  { %1013 = vrot.lane.b32.xlu1 %v5069_v45, %s4856_s7 }
 0x629   :  { %v763_v30 = vpop.xlane.xlu0 %762 }
 0x62a   :  { %v767_v31 = vsub.f32 %v759_v19, %v763_v30 }
 0x62c   :  { %v769_v32 = vmul.f32 1.442695, %v767_v31 }
 0x62e   :  { %4715 = vpow2.f32 %v769_v32 }
 0x638   :  { %v4716_v33 = vpop.eup %4715 }
 0x639   :  { %v766_v34 = vpop.xlane.xlu1 %765  ;;  %v773_v35 = vsel %vm273_vm2, %v4716_v33, 0.0 }
 0x63a   :  { %774 = vadd.xlane.f32.xlu0 %v773_v35  ;;  %v768_v38 = vsub.f32 %v760_v27, %v766_v34 }
 0x63c   :  { %v771_v40 = vmul.f32 1.442695, %v768_v38 }
 0x63d   :  { %v860_v37 = vpop.permute.xlu1 %859 }
 0x63e   :  { %4276 = vmatpush3.msra.mxu1 %v860_v37  ;;  %4717 = vpow2.f32 %v771_v40 }
 0x63f   :  { %4285 = vmatprep.subr.mxu1 %v4848_v36 }
 0x641   :  { %v938_v51 = vpop.permute.xlu1 %937 }
 0x645   :  { %v1016_v55 = vpop.permute.xlu1 %1015 }
 0x648   :  { %v4718_v42 = vpop.eup %4717 }
 0x649   :  { %v776_v44 = vsel %vm273_vm2, %v4718_v42, 0.0  ;;  %v1014_v57 = vpop.permute.xlu1 %1013 }
 0x650   :  { %783 = vrot.lane.b32.xlu0 %v5052_v41, %s4854_s25 }
 0x66f   :  { %777 = vadd.xlane.f32.xlu0 %v776_v44 }
 0x685   :  { %935 = vrot.lane.b32.xlu0 %v5060_v43, %s4856_s7 }
 0x6c7   :  { %v775_v46 = vpop.xlane.xlu0 %774 }
 0x6c8   :  { %4719 = vrcp.f32 %v775_v46 }
 0x6cb   :  { %v784_v47 = vpop.permute.xlu0 %783 }
 0x6cc   :  { %4271 = vmatpush3.msra.mxu0 %v784_v47 }
 0x6cd   :  { %4280 = vmatprep.subr.mxu0 %v4848_v36 }
 0x6d2   :  { %v4720_v48 = vpop.eup %4719 }
 0x6d3   :  { %v780_v50 = vmul.f32 %v4720_v48, %v4716_v33 }
 0x6d5   :  { %4273 = vmatmul.mubr.msk.f32.vlgmr.msra.gmra.mrb[2].mxu0 %vm273_vm2, %v780_v50 }
 0x6d6   :  { %4281 = vmatpush3.xpose.msk.msra.mxu0 %vm273_vm2, %v938_v51  ;;  %4282 = vmatprep.mubr.msk.f32.mxu0 %vm4849_vm1, %v4848_v36 }
 0x6d7   :  { %4290 = vmatprep.subr.mxu0 %v4848_v36 }
 0x6fc   :  { %v778_v52 = vpop.xlane.xlu0 %777 }
 0x6fd   :  { %4721 = vrcp.f32 %v778_v52 }
 0x700   :  { %v936_v53 = vpop.permute.xlu0 %935 }
 0x701   :  { %4283 = vmatmul.mubr.msk.f32.vlgmr.msra.gmra.mrb[4].mxu0 %vm273_vm2, %v936_v53 }
 0x702   :  { %4292 = vmatprep.mubr.msk.f32.mxu0 %vm4849_vm1, %v4848_v36 }
 0x707   :  { %v4722_v54 = vpop.eup %4721 }
 0x708   :  { %v782_v56 = vmul.f32 %v4722_v54, %v4718_v42 }
 0x70a   :  { %4278 = vmatmul.mubr.msk.f32.vlgmr.msra.gmra.mrb[12].mxu1 %vm273_vm2, %v782_v56 }
 0x70b   :  { %4286 = vmatpush3.xpose.msk.msra.mxu1 %vm273_vm2, %v1016_v55  ;;  %4287 = vmatprep.mubr.msk.f32.mxu1 %vm4849_vm1, %v4848_v36 }
 0x70c   :  { %4295 = vmatprep.subr.mxu1 %v4848_v36 }
 0x70e   :  { %4288 = vmatmul.mubr.msk.f32.vlgmr.msra.gmra.mrb[14].mxu1 %vm273_vm2, %v1014_v57 }
 0x70f   :  { %4297 = vmatprep.mubr.msk.f32.mxu1 %vm4849_vm1, %v4848_v36 }
 0x7a8   :  { %v5160_v58 = vpop.f32.mrb[2].mxu0 }
 0x7a9   :  { %v4274_v59 = vpop.f32.mrb[3].mxu0 }
 0x7d4   :  { %v1009_v60 = vpop.f32.mrb[4].mxu0 }
 0x7d5   :  { %v1091_v61 = vsel %vm5076_vm3, -1e+30, %v1009_v60  ;;  %v4284_v62 = vpop.f32.mrb[5].mxu0 }
 0x7d6   :  { %v1093_v63 = vsel %vm273_vm2, %v1091_v61, -inf }
 0x7d7   :  { %1094 = vmax.xlane.f32.xlu0 %v1093_v63 }
 0x7dd   :  { %v5165_v2 = vpop.f32.mrb[12].mxu1 }
 0x7de   :  { %v4279_v3 = vpop.f32.mrb[13].mxu1 }
 0x7df   :  { %v1631_v3 = vld [vmem:[%s4889_s17] sm:$0xff] }
 0x7e1   :  { %v1087_v4 = vpop.f32.mrb[14].mxu1 }
 0x7e2   :  { %v1092_v5 = vsel %vm5076_vm3, -1e+30, %v1087_v4  ;;  %v4289_v6 = vpop.f32.mrb[15].mxu1 }
 0x7e3   :  { %v1096_v7 = vsel %vm273_vm2, %v1092_v5, -inf  ;;  %v1634_v6 = vld [vmem:[%s4889_s17 + $0x18] sm:$0xff] }
 0x7e4   :  { %1097 = vmax.xlane.f32.xlu1 %v1096_v7 }
 0x7f5   :  { %1191 = vrot.lane.b32.xlu1 %v5050_v39, %s4857_s10 }
 0x7f9   :  { %1269 = vrot.lane.b32.xlu1 %v5052_v41, %s4858_s11 }
 0x7fd   :  { %1347 = vrot.lane.b32.xlu1 %v5050_v39, %s4858_s11 }
 0x801   :  { %1345 = vrot.lane.b32.xlu1 %v5069_v45, %s4859_s15 }
 0x864   :  { %v1095_v8 = vpop.xlane.xlu0 %1094 }
 0x865   :  { %v1099_v9 = vsub.f32 %v1091_v61, %v1095_v8 }
 0x867   :  { %v1101_v10 = vmul.f32 1.442695, %v1099_v9 }
 0x869   :  { %4723 = vpow2.f32 %v1101_v10 }
 0x871   :  { %v1098_v11 = vpop.xlane.xlu1 %1097 }
 0x872   :  { %v1100_v15 = vsub.f32 %v1092_v5, %v1098_v11  ;;  %v1633_v5 = vld [vmem:[%s4889_s17 + $0x10] sm:$0xff] }
 0x873   :  { %v4724_v12 = vpop.eup %4723  ;;  %v4548_v7 = vpack.c.bf16 %v1634_v6, %v1633_v5  ;;  %v1881_v6 = vld [vmem:[%s4929_s24 + $0x10] sm:$0xff] }
 0x874   :  { %v1105_v13 = vsel %vm273_vm2, %v4724_v12, 0.0  ;;  %v1103_v16 = vmul.f32 1.442695, %v1100_v15 }
 0x875   :  { %1106 = vadd.xlane.f32.xlu0 %v1105_v13  ;;  %v1192_v14 = vpop.permute.xlu1 %1191 }
 0x876   :  { %4296 = vmatpush3.msra.mxu1 %v1192_v14  ;;  %4725 = vpow2.f32 %v1103_v16 }
 0x877   :  { %4305 = vmatprep.subr.mxu1 %v4848_v36 }
 0x879   :  { %v1270_v23 = vpop.permute.xlu1 %1269 }
 0x87d   :  { %v1348_v27 = vpop.permute.xlu1 %1347 }
 0x880   :  { %v4726_v45 = vpop.eup %4725 }
 0x881   :  { %v1108_v17 = vsel %vm273_vm2, %v4726_v45, 0.0  ;;  %v1346_v29 = vpop.permute.xlu1 %1345 }
 0x88b   :  { %1115 = vrot.lane.b32.xlu0 %v5052_v41, %s4857_s10 }
 0x8aa   :  { %1109 = vadd.xlane.f32.xlu0 %v1108_v17 }
 0x8c0   :  { %1267 = vrot.lane.b32.xlu0 %v5060_v43, %s4859_s15 }
 0x902   :  { %v1107_v18 = vpop.xlane.xlu0 %1106 }
 0x903   :  { %4727 = vrcp.f32 %v1107_v18 }
 0x906   :  { %v1116_v19 = vpop.permute.xlu0 %1115 }
 0x907   :  { %4291 = vmatpush3.msra.mxu0 %v1116_v19 }
 0x908   :  { %4300 = vmatprep.subr.mxu0 %v4848_v36 }
 0x90d   :  { %v4728_v20 = vpop.eup %4727 }
 0x90e   :  { %v1112_v21 = vmul.f32 %v4728_v20, %v4724_v12 }
 0x910   :  { %4293 = vmatmul.mubr.msk.f32.vlgmr.msra.gmra.mrb[6].mxu0 %vm273_vm2, %v1112_v21 }
 0x911   :  { %4301 = vmatpush3.xpose.msk.msra.mxu0 %vm273_vm2, %v1270_v23  ;;  %4302 = vmatprep.mubr.msk.f32.mxu0 %vm4849_vm1, %v4848_v36 }
 0x912   :  { %4310 = vmatprep.subr.mxu0 %v4848_v36 }
 0x937   :  { %v1110_v25 = vpop.xlane.xlu0 %1109 }
 0x938   :  { %4729 = vrcp.f32 %v1110_v25 }
 0x93b   :  { %v1268_v43 = vpop.permute.xlu0 %1267 }
 0x93c   :  { %4303 = vmatmul.mubr.msk.f32.vlgmr.msra.gmra.mrb[8].mxu0 %vm273_vm2, %v1268_v43 }
 0x93d   :  { %4312 = vmatprep.mubr.msk.f32.mxu0 %vm4849_vm1, %v4848_v36 }
 0x942   :  { %v4730_v26 = vpop.eup %4729 }
 0x943   :  { %v1114_v28 = vmul.f32 %v4730_v26, %v4726_v45 }
 0x945   :  { %4298 = vmatmul.mubr.msk.f32.vlgmr.msra.gmra.mrb[16].mxu1 %vm273_vm2, %v1114_v28 }
 0x946   :  { %4306 = vmatpush3.xpose.msk.msra.mxu1 %vm273_vm2, %v1348_v27  ;;  %4307 = vmatprep.mubr.msk.f32.mxu1 %vm4849_vm1, %v4848_v36 }
 0x947   :  { %4315 = vmatprep.subr.mxu1 %v4848_v36 }
 0x949   :  { %4308 = vmatmul.mubr.msk.f32.vlgmr.msra.gmra.mrb[18].mxu1 %vm273_vm2, %v1346_v29 }
 0x94a   :  { %4317 = vmatprep.mubr.msk.f32.mxu1 %vm4849_vm1, %v4848_v36 }
 0x9e3   :  { %v1187_v30 = vpop.f32.mrb[6].mxu0 }
 0x9e4   :  { %v4294_v31 = vpop.f32.mrb[7].mxu0 }
 0xa0f   :  { %v1341_v32 = vpop.f32.mrb[8].mxu0 }
 0xa10   :  { %v1423_v33 = vsel %vm5076_vm3, -1e+30, %v1341_v32  ;;  %v4304_v34 = vpop.f32.mrb[9].mxu0 }
 0xa11   :  { %v1425_v35 = vsel %vm273_vm2, %v1423_v33, -inf }
 0xa12   :  { %1426 = vmax.xlane.f32.xlu0 %v1425_v35 }
 0xa18   :  { %v1263_v37 = vpop.f32.mrb[16].mxu1 }
 0xa19   :  { %v4299_v38 = vpop.f32.mrb[17].mxu1 }
 0xa1c   :  { %v1419_v40 = vpop.f32.mrb[18].mxu1 }
 0xa1d   :  { %v1424_v42 = vsel %vm5076_vm3, -1e+30, %v1419_v40  ;;  %v4309_v44 = vpop.f32.mrb[19].mxu1 }
 0xa1e   :  { %v1428_v46 = vsel %vm273_vm2, %v1424_v42, -inf  ;;  %v1770_v44 = vld [vmem:[%s4919_s14 + $0x8] sm:$0xff] }
 0xa1f   :  { %1429 = vmax.xlane.f32.xlu1 %v1428_v46 }
 0xa30   :  { %1523 = vrot.lane.b32.xlu1 %v5050_v39, %s4860_s16 }
 0xa34   :  { %1601 = vrot.lane.b32.xlu1 %v5160_v58, %s4861_s18 }
 0xa38   :  { %1603 = vrot.lane.b32.xlu1 %v5165_v2, %s4861_s18 }
 0xa3c   :  { %1611 = vrot.lane.b32.xlu1 %v1263_v37, %s4862_s22 }
 0xa9f   :  { %v1427_v47 = vpop.xlane.xlu0 %1426 }
 0xaa0   :  { %v1431_v48 = vsub.f32 %v1423_v33, %v1427_v47  ;;  %v1771_v47 = vld [vmem:[%s4919_s14 + $0x10] sm:$0xff] }
 0xaa2   :  { %v1433_v50 = vmul.f32 1.442695, %v1431_v48  ;;  %v1772_v48 = vld [vmem:[%s4919_s14 + $0x18] sm:$0xff] }
 0xaa4   :  { %4731 = vpow2.f32 %v1433_v50  ;;  %v4556_v50 = vpack.c.bf16 %v1772_v48, %v1771_v47 }
 0xaac   :  { %v1430_v51 = vpop.xlane.xlu1 %1429 }
 0xaad   :  { %v1432_v52 = vsub.f32 %v1424_v42, %v1430_v51  ;;  %v1769_v42 = vld [vmem:[%s4919_s14] sm:$0xff]  ;;  %s5575_s14 = sld [smem:[#allocation7_spill]] }
 0xaae   :  { %v4732_v53 = vpop.eup %4731  ;;  %v4552_v46 = vpack.c.bf16 %v1770_v44, %v1769_v42  ;;  %v1879_v51 = vld [vmem:[%s4929_s24] sm:$0xff] }
 0xaaf   :  { %v1435_v54 = vmul.f32 1.442695, %v1432_v52  ;;  %v1437_v39 = vsel %vm273_vm2, %v4732_v53, 0.0  ;;  %v1880_v52 = vld [vmem:[%s4929_s24 + $0x8] sm:$0xff] }
 0xab0   :  { %1438 = vadd.xlane.f32.xlu0 %v1437_v39  ;;  %v1524_v55 = vpop.permute.xlu1 %1523 }
 0xab1   :  { %4733 = vpow2.f32 %v1435_v54  ;;  %4316 = vmatpush3.msra.mxu1 %v1524_v55 }
 0xab2   :  { %4553 = vmatprep.subr.bf16.mxu1 %v4552_v46 }
 0xab4   :  { %v1602_v12 = vpop.permute.xlu1 %1601 }
 0xab5   :  { %v1623_v15 = vsel %vm273_vm2, %v5121_v22, %v1602_v12  ;;  %v4035_v22 = vld [vmem:[%s4894_s21] ss:$0 sm:$0xff]  ;;  %v1885_v12 = vld [vmem:[%s4929_s24 + $0x30] sm:$0xff]  ;;  %s5572_s21 = sld [smem:[#allocation9_spill]] }
 0xab8   :  { %v1604_v14 = vpop.permute.xlu1 %1603 }
 0xab9   :  { %v1624_v19 = vsel %vm273_vm2, %v5123_v24, %v1604_v14 }
 0xabb   :  { %v4734_v56 = vpop.eup %4733 }
 0xabc   :  { %v1440_v57 = vsel %vm273_vm2, %v4734_v56, 0.0  ;;  %v1612_v18 = vpop.permute.xlu1 %1611 }
 0xabd   :  { %1441 = vadd.xlane.f32.xlu0 %v1440_v57  ;;  %v1627_v20 = vsel %vm1625_vm5, %v1624_v19, %v1612_v18  ;;  %v1890_v18 = vld [vmem:[%s4929_s24 + $0x58] sm:$0xff] }
 0xad3   :  { %1447 = vrot.lane.b32.xlu0 %v5052_v41, %s4860_s16  ;;  %v1632_v41 = vld [vmem:[%s4889_s17 + $0x8] sm:$0xff]  ;;  %s5571_s17 = sld [smem:[#allocation8_spill]] }
 0xad4   :  { %v4544_v4 = vpack.c.bf16 %v1632_v41, %v1631_v3 }
 0xad7   :  { %1609 = vrot.lane.b32.xlu0 %v1187_v30, %s4862_s22 }
 0xb3d   :  { %v1439_v58 = vpop.xlane.xlu0 %1438 }
 0xb3e   :  { %4735 = vrcp.f32 %v1439_v58 }
 0xb48   :  { %v4736_v60 = vpop.eup %4735 }
 0xb49   :  { %v1444_v61 = vmul.f32 %v4736_v60, %v4732_v53  ;;  %v4560_v53 = vpack.c.bf16 %v1880_v52, %v1879_v51  ;;  %v4038_v60 = vld [vmem:[%s4909_s3] ss:$0 sm:$0xff]  ;;  %s5573_s3 = sld [smem:[#allocation5_spill]] }
 0xb4a   :  { %v1442_v59 = vpop.xlane.xlu0 %1441 }
 0xb4b   :  { %4737 = vrcp.f32 %v1442_v59 }
 0xb4e   :  { %v1448_v62 = vpop.permute.xlu0 %1447 }
 0xb4f   :  { %4311 = vmatpush3.msra.mxu0 %v1448_v62  ;;  %v4039_v62 = vld [vmem:[%s4914_s8] ss:$0 sm:$0xff]  ;;  %s5574_s8 = sld [smem:[#allocation6_spill]] }
 0xb50   :  { %4313 = vmatmul.mubr.msk.f32.vlgmr.msra.gmra.mrb[10].mxu0 %vm273_vm2, %v1444_v61  ;;  %4545 = vmatprep.subr.bf16.mxu0 %v4544_v4 }
 0xb51   :  { %4547 = vmatpush3.bf16.msra.mxu0 %v4544_v4 }
 0xb52   :  { %4549 = vmatprep.subr.bf16.mxu0 %v4548_v7  ;;  %v1610_v13 = vpop.permute.xlu0 %1609 }
 0xb53   :  { %v1626_v16 = vsel %vm1625_vm5, %v1623_v15, %v1610_v13  ;;  %v1886_v13 = vld [vmem:[%s4929_s24 + $0x38] sm:$0xff]  ;;  %v1887_v15 = vld [vmem:[%s4929_s24 + $0x40] sm:$0xff] }
 0xb54   :  { %v4572_v14 = vpack.c.bf16 %v1886_v13, %v1885_v12 }
 0xb55   :  { %v4738_v63 = vpop.eup %4737  ;;  %4551 = vmatpush3.bf16.msra.mxu0 %v4548_v7  ;;  %v1882_v7 = vld [vmem:[%s4929_s24 + $0x18] sm:$0xff] }
 0xb56   :  { %v1446_v2 = vmul.f32 %v4738_v63, %v4734_v56  ;;  %4561 = vmatprep.subr.bf16.mxu0 %v4560_v53 }
 0xb58   :  { %4318 = vmatmul.mubr.msk.f32.vlgmr.msra.gmra.mrb[20].mxu1 %vm273_vm2, %v1446_v2 }
 0xb59   :  { %4555 = vmatpush3.bf16.msra.mxu1 %v4552_v46 }
 0xb5a   :  { %4557 = vmatprep.subr.bf16.mxu1 %v4556_v50 }
 0xb5d   :  { %4559 = vmatpush3.bf16.msra.mxu1 %v4556_v50 }
 0xc23   :  { %v1519_v8 = vpop.f32.mrb[10].mxu0 }
 0xc24   :  { %1617 = vrot.lane.b32.xlu0 %v1519_v8, %s4863_s23  ;;  %v4314_v9 = vpop.f32.mrb[11].mxu0  ;;  %v4564_v8 = vpack.c.bf16 %v1882_v7, %v1881_v6  ;;  %v2023_v7 = vld [vmem:[%s4939_s6] sm:$0xff] }
 0xc25   :  { %v1883_v9 = vld [vmem:[%s4929_s24 + $0x20] sm:$0xff] }
 0xc2b   :  { %v1595_v10 = vpop.f32.mrb[20].mxu1 }
 0xc2c   :  { %1619 = vrot.lane.b32.xlu1 %v1595_v10, %s4863_s23  ;;  %v4319_v11 = vpop.f32.mrb[21].mxu1  ;;  %v1884_v10 = vld [vmem:[%s4929_s24 + $0x28] sm:$0xff] }
 0xc2d   :  { %v4568_v11 = vpack.c.bf16 %v1884_v10, %v1883_v9  ;;  %v2025_v10 = vld [vmem:[%s4939_s6 + $0x10] sm:$0xff] }
 0xc96   :  { %v1618_v45 = vpop.permute.xlu0 %1617 }
 0xc97   :  { %v1629_v17 = vsel %vm1628_vm4, %v1626_v16, %v1618_v45  ;;  %v1888_v16 = vld [vmem:[%s4929_s24 + $0x48] sm:$0xff] }
 0xc98   :  { %4328 = vmatprep.mubr.msk.f32.mxu0 %vm132_vm0, %v1629_v17  ;;  %v4576_v45 = vpack.c.bf16 %v1888_v16, %v1887_v15  ;;  %v1889_v17 = vld [vmem:[%s4929_s24 + $0x50] sm:$0xff] }
 0xc99   :  { %v4580_v19 = vpack.c.bf16 %v1890_v18, %v1889_v17 }
 0xc9e   :  { %v1620_v21 = vpop.permute.xlu1 %1619 }
 0xc9f   :  { %v1630_v23 = vsel %vm1628_vm4, %v1627_v20, %v1620_v21  ;;  %v1891_v20 = vld [vmem:[%s4929_s24 + $0x60] sm:$0xff]  ;;  %v1892_v21 = vld [vmem:[%s4929_s24 + $0x68] sm:$0xff] }
 0xca0   :  { %4329 = vmatmul.mubr.msk.f32.vlgmr.msra.gmra.mrb[12].mxu0 %vm132_vm0, %v1630_v23  ;;  %v4584_v23 = vpack.c.bf16 %v1892_v21, %v1891_v20 }
 0xca1   :  { %4563 = vmatpush3.bf16.msra.mxu0 %v4560_v53 }
 0xca2   :  { %4565 = vmatprep.subr.bf16.mxu0 %v4564_v8 }
 0xca5   :  { %4567 = vmatpush3.bf16.msra.mxu0 %v4564_v8  ;;  %v2024_v8 = vld [vmem:[%s4939_s6 + $0x8] sm:$0xff] }
 0xca6   :  { %4569 = vmatprep.subr.bf16.mxu0 %v4568_v11  ;;  %v4592_v9 = vpack.c.bf16 %v2024_v8, %v2023_v7 }
 0xca8   :  { %4593 = vmatprep.subr.bf16.mxu1 %v4592_v9 }
 0xca9   :  { %4571 = vmatpush3.bf16.msra.mxu0 %v4568_v11  ;;  %v2026_v11 = vld [vmem:[%s4939_s6 + $0x18] sm:$0xff]  ;;  %s5579_s6 = sld [smem:[#allocation11_spill]] }
 0xcaa   :  { %4573 = vmatprep.subr.bf16.mxu0 %v4572_v14  ;;  %v4596_v12 = vpack.c.bf16 %v2026_v11, %v2025_v10 }
 0xcad   :  { %4575 = vmatpush3.bf16.msra.mxu0 %v4572_v14 }
 0xcae   :  { %4577 = vmatprep.subr.bf16.mxu0 %v4576_v45 }
 0xcb1   :  { %4579 = vmatpush3.bf16.msra.mxu0 %v4576_v45 }
 0xcb2   :  { %4581 = vmatprep.subr.bf16.mxu0 %v4580_v19 }
 0xcb5   :  { %4583 = vmatpush3.bf16.msra.mxu0 %v4580_v19  ;;  %v4044_v19 = vld [vmem:[%s5571_s17] ss:$0 sm:$0xff] }
 0xcb6   :  { %4585 = vmatprep.subr.bf16.mxu0 %v4584_v23 }
 0xcb9   :  { %4587 = vmatpush3.bf16.msra.mxu0 %v4584_v23 }
 0xd73   :  { %v4330_v25 = vpop.f32.mrb[12].mxu0 }
 0xd74   :  { %v1720_v43 = vadd.f32 %v4330_v25, %v4035_v22  ;;  %v1714_v26 = vpop.f32.mrb[13].mxu0  ;;  %v1894_v25 = vld [vmem:[%s4929_s24 + $0x78] sm:$0xff] }
 0xd75   :  { %v1715_v27 = vadd.f32 %v4035_v22, %v1714_v26  ;;  %v1893_v22 = vld [vmem:[%s4929_s24 + $0x70] sm:$0xff]  ;;  %v4040_v26 = vld [vmem:[%s4924_s19] ss:$0 sm:$0xff]  ;;  %s5576_s19 = sld [smem:[#allocation12_spill]]  ;;  %s5577_s24 = sld [smem:[#allocation14_spill]] }
 0xd76   :  { %v5240_v28 = vadd.f32 %v1720_v43, %v5025_v1  ;;  %v4588_v43 = vpack.c.bf16 %v1894_v25, %v1893_v22  ;;  %v4045_v22 = vld [vmem:[%s5572_s21] ss:$0 sm:$0xff] }
 0xd77   :  { %v5243_v29 = vadd.f32 %v1715_v27, %v5022_v0 }
 0xd78   :  { %v1730_v24 = vsel %vm132_vm0, %v5240_v28, 0.0  ;;  %4589 = vmatprep.subr.bf16.mxu0 %v4588_v43 }
 0xd79   :  { %1731 = vadd.xlane.f32.xlu1 %v1730_v24  ;;  %v1727_v30 = vsel %vm132_vm0, %v5243_v29, 0.0  ;;  %4591 = vmatpush3.bf16.msra.mxu0 %v4588_v43 }
 0xd7a   :  { %1728 = vadd.xlane.f32.xlu0 %v1727_v30  ;;  %4418 = vmatprep.subr.mxu0 %v4848_v36 }
 0xe06   :  { %v1732_v31 = vpop.xlane.xlu1 %1731 }
 0xe07   :  { %v1734_v32 = vmul.f32 0.03125, %v1732_v31  ;;  %v1729_v33 = vpop.xlane.xlu0 %1728 }
 0xe08   :  { %v1733_v1 = vmul.f32 0.03125, %v1729_v33 }
 0xe09   :  { %v1736_v34 = vsub.f32 %v5240_v28, %v1734_v32 }
 0xe0a   :  { %v1735_v0 = vsub.f32 %v5243_v29, %v1733_v1 }
 0xe0b   :  { %v1738_v38 = vmul.f32 %v1736_v34, %v1736_v34 }
 0xe0c   :  { %v1737_v35 = vmul.f32 %v1735_v0, %v1735_v0 }
 0xe0d   :  { %v1742_v40 = vsel %vm132_vm0, %v1738_v38, 0.0 }
 0xe0e   :  { %v1739_v37 = vsel %vm132_vm0, %v1737_v35, 0.0 }
 0xe0f   :  { %1740 = vadd.xlane.f32.xlu0 %v1739_v37 }
 0xe13   :  { %1743 = vadd.xlane.f32.xlu0 %v1742_v40 }
 0xe9c   :  { %v1741_v54 = vpop.xlane.xlu0 %1740 }
 0xe9d   :  { %v1745_v39 = vmul.f32 0.03125, %v1741_v54  ;;  %v4043_v54 = vld [vmem:[%s4934_s30] ss:$0 sm:$0xff]  ;;  %s5578_s30 = sld [smem:[#allocation10_spill]] }
 0xe9f   :  { %v1747_v55 = vadd.f32 1e-05, %v1745_v39 }
 0xea0   :  { %v1744_v56 = vpop.xlane.xlu0 %1743 }
 0xea1   :  { %4739 = vrsqrt.f32 %v1747_v55  ;;  %v1746_v57 = vmul.f32 0.03125, %v1744_v56 }
 0xea3   :  { %v1748_v58 = vadd.f32 1e-05, %v1746_v57 }
 0xea5   :  { %4741 = vrsqrt.f32 %v1748_v58 }
 0xeab   :  { %v4740_v59 = vpop.eup %4739 }
 0xeac   :  { %v1751_v61 = vmul.f32 %v4740_v59, %v1735_v0 }
 0xeae   :  { %v1759_v63 = vmul.f32 %v4038_v60, %v1751_v61 }
 0xeaf   :  { %v4742_v2 = vpop.eup %4741 }
 0xeb0   :  { %v1752_v3 = vmul.f32 %v4742_v2, %v1736_v34  ;;  %v1767_v41 = vadd.f32 %v4039_v62, %v1759_v63 }
 0xeb2   :  { %v1760_v4 = vmul.f32 %v4038_v60, %v1752_v3  ;;  %4339 = vmatprep.mubr.msk.f32.mxu1 %vm132_vm0, %v1767_v41 }
 0xeb4   :  { %v1768_v5 = vadd.f32 %v4039_v62, %v1760_v4 }
 0xeb6   :  { %4340 = vmatmul.mubr.msk.f32.vlgmr.msra.gmra.mrb[22].mxu1 %vm132_vm0, %v1768_v5 }
 0xeb7   :  { %4595 = vmatpush3.bf16.msra.mxu1 %v4592_v9 }
 0xeb8   :  { %4597 = vmatprep.subr.bf16.mxu1 %v4596_v12 }
 0xebb   :  { %4599 = vmatpush3.bf16.msra.mxu1 %v4596_v12 }
 0xebc   :  { %4388 = vmatprep.subr.mxu1 %v4848_v36 }
 0xf89   :  { %v4341_v27 = vpop.f32.mrb[22].mxu1 }
 0xf8a   :  { %v1858_v24 = vadd.f32 %v4341_v27, %v4040_v26  ;;  %v1852_v30 = vpop.f32.mrb[23].mxu1 }
 0xf8b   :  { %v1853_v31 = vadd.f32 %v4040_v26, %v1852_v30 }
 0xf8c   :  { %v1864_v32 = vmul.f32 0.044715, %v1858_v24  ;;  %v1862_v51 = vmul.f32 0.5, %v1858_v24 }
 0xf8d   :  { %v1863_v33 = vmul.f32 0.044715, %v1853_v31  ;;  %v1861_v48 = vmul.f32 0.5, %v1853_v31 }
 0xf8e   :  { %v1866_v1 = vmul.f32 %v1864_v32, %v1858_v24 }
 0xf8f   :  { %v1865_v34 = vmul.f32 %v1863_v33, %v1853_v31 }
 0xf90   :  { %v1868_v0 = vmul.f32 %v1866_v1, %v1858_v24 }
 0xf91   :  { %v1867_v35 = vmul.f32 %v1865_v34, %v1853_v31 }
 0xf92   :  { %v1870_v37 = vadd.f32 %v1868_v0, %v1858_v24  ;;  %v4046_v24 = vld [vmem:[%s5573_s3] ss:$0 sm:$0xff] }
 0xf93   :  { %v1869_v38 = vadd.f32 %v1867_v35, %v1853_v31 }
 0xf94   :  { %v1872_v40 = vmul.f32 0.7978846, %v1870_v37 }
 0xf95   :  { %v1871_v42 = vmul.f32 0.7978846, %v1869_v38 }
 0xf96   :  { %4743 = vtanh.f32 %v1872_v40 }
 0xf97   :  { %4745 = vtanh.f32 %v1871_v42 }
 0xfa0   :  { %v4744_v44 = vpop.eup %4743 }
 0xfa1   :  { %v4746_v46 = vpop.eup %4745  ;;  %v1876_v47 = vadd.f32 1.0, %v4744_v44 }
 0xfa2   :  { %v1875_v50 = vadd.f32 1.0, %v4746_v46 }
 0xfa3   :  { %v1878_v53 = vmul.f32 %v1876_v47, %v1862_v51 }
 0xfa4   :  { %v1877_v52 = vmul.f32 %v1875_v50, %v1861_v48 }
 0xfa6   :  { %4374 = vmatprep.mubr.f32.mxu0 %v1877_v52 }
 0xfa7   :  { %4375 = vmatmul.mubr.f32.vlgmr.msra.gmra.mrb[14].mxu0 %v1878_v53 }
 0xfa8   :  { %4420 = vmatprep.mubr.msk.f32.mxu0 %vm4849_vm1, %v4848_v36 }
0x107a   :  { %v4376_v39 = vpop.f32.mrb[14].mxu0 }
0x107b   :  { %v1974_v55 = vadd.f32 %v4376_v39, %v4043_v54  ;;  %v1968_v56 = vpop.f32.mrb[15].mxu0 }
0x107c   :  { %v1969_v57 = vadd.f32 %v4043_v54, %v1968_v56 }
0x107d   :  { %v5283_v58 = vadd.f32 %v1974_v55, %v5240_v28 }
0x107e   :  { %v5286_v59 = vadd.f32 %v1969_v57, %v5243_v29 }
0x107f   :  { %v1984_v60 = vsel %vm132_vm0, %v5283_v58, 0.0 }
0x1080   :  { %1985 = vadd.xlane.f32.xlu1 %v1984_v60  ;;  %v1981_v61 = vsel %vm132_vm0, %v5286_v59, 0.0 }
0x1081   :  { %1982 = vadd.xlane.f32.xlu0 %v1981_v61 }
0x110d   :  { %v1986_v62 = vpop.xlane.xlu1 %1985 }
0x110e   :  { %v1988_v63 = vmul.f32 0.03125, %v1986_v62  ;;  %v1983_v2 = vpop.xlane.xlu0 %1982 }
0x110f   :  { %v1987_v28 = vmul.f32 0.03125, %v1983_v2 }
0x1110   :  { %v1990_v3 = vsub.f32 %v5283_v58, %v1988_v63 }
0x1111   :  { %v1989_v29 = vsub.f32 %v5286_v59, %v1987_v28 }
0x1112   :  { %v1992_v41 = vmul.f32 %v1990_v3, %v1990_v3 }
0x1113   :  { %v1991_v4 = vmul.f32 %v1989_v29, %v1989_v29 }
0x1114   :  { %v1996_v5 = vsel %vm132_vm0, %v1992_v41, 0.0 }
0x1115   :  { %1997 = vadd.xlane.f32.xlu1 %v1996_v5  ;;  %v1993_v6 = vsel %vm132_vm0, %v1991_v4, 0.0 }
0x1116   :  { %1994 = vadd.xlane.f32.xlu0 %v1993_v6 }
0x11a2   :  { %v1998_v13 = vpop.xlane.xlu1 %1997 }
0x11a3   :  { %v2000_v14 = vmul.f32 0.03125, %v1998_v13  ;;  %v1995_v15 = vpop.xlane.xlu0 %1994 }
0x11a4   :  { %v1999_v16 = vmul.f32 0.03125, %v1995_v15 }
0x11a5   :  { %v2002_v45 = vadd.f32 1e-05, %v2000_v14 }
0x11a6   :  { %v2001_v17 = vadd.f32 1e-05, %v1999_v16 }
0x11a7   :  { %4747 = vrsqrt.f32 %v2002_v45 }
0x11a8   :  { %4749 = vrsqrt.f32 %v2001_v17 }
0x11b1   :  { %v4748_v18 = vpop.eup %4747 }
0x11b2   :  { %v4750_v20 = vpop.eup %4749  ;;  %v2006_v21 = vmul.f32 %v4748_v18, %v1990_v3 }
0x11b3   :  { %v2005_v23 = vmul.f32 %v4750_v20, %v1989_v29 }
0x11b4   :  { %v2014_v25 = vmul.f32 %v4044_v19, %v2006_v21 }
0x11b5   :  { %v2013_v43 = vmul.f32 %v4044_v19, %v2005_v23 }
0x11b6   :  { %v2022_v27 = vadd.f32 %v4045_v22, %v2014_v25 }
0x11b7   :  { %v2021_v26 = vadd.f32 %v4045_v22, %v2013_v43 }
0x11b9   :  { %4385 = vmatprep.mubr.msk.f32.mxu1 %vm132_vm0, %v2021_v26 }
0x11ba   :  { %4386 = vmatmul.mubr.msk.f32.vlgmr.msra.gmra.mrb[24].mxu1 %vm132_vm0, %v2022_v27 }
0x11bb   :  { %4390 = vmatprep.mubr.msk.f32.mxu1 %vm4849_vm1, %v4848_v36 }
0x128d   :  { %v4387_v30 = vpop.f32.mrb[24].mxu1 }
0x128e   :  { %v5308_v31 = vadd.f32 %v4387_v30, %v4046_v24  ;;  %v2106_v32 = vpop.f32.mrb[25].mxu1 }
0x128f   :  { %v5310_v33 = vadd.f32 %v4046_v24, %v2106_v32 }
0x1290   :  { %2196 = vrot.lane.b32.xlu1 %v5308_v31, %s4850_s0  ;;  %v5327_v35 = vmul.f32 0.35355338, %v5308_v31 }
0x1291   :  { %2118 = vrot.lane.b32.xlu0 %v5310_v33, %s4850_s0  ;;  %v5318_v34 = vmul.f32 0.35355338, %v5310_v33 }
0x1302   :  { %v2197_v0 = vpop.permute.xlu1 %2196 }
0x1303   :  { %v2119_v1 = vpop.permute.xlu0 %2118 }
0x1304   :  { %4389 = vmatpush3.xpose.msk.msra.mxu1 %vm273_vm2, %v2119_v1 }
0x1305   :  { %4393 = vmatprep.subr.mxu1 %v4848_v36 }
0x1307   :  { %4391 = vmatmul.mubr.msk.f32.vlgmr.msra.gmra.mrb[26].mxu1 %vm273_vm2, %v5318_v34 }
0x1308   :  { %4394 = vmatpush3.xpose.msk.msra.mxu1 %vm273_vm2, %v2197_v0  ;;  %4395 = vmatprep.mubr.msk.f32.mxu1 %vm4849_vm1, %v4848_v36 }
0x1309   :  { %4398 = vmatprep.subr.mxu1 %v4848_v36 }
0x130b   :  { %4396 = vmatmul.mubr.msk.f32.vlgmr.msra.gmra.mrb[28].mxu1 %vm273_vm2, %v5327_v35 }
0x130c   :  { %4400 = vmatprep.mubr.msk.f32.mxu1 %vm4849_vm1, %v4848_v36 }
0x13da   :  { %v2191_v37 = vpop.f32.mrb[26].mxu1 }
0x13db   :  { %v2273_v38 = vsel %vm5076_vm3, -1e+30, %v2191_v37  ;;  %v4392_v40 = vpop.f32.mrb[27].mxu1 }
0x13dc   :  { %v2275_v42 = vsel %vm273_vm2, %v2273_v38, -inf }
0x13dd   :  { %2276 = vmax.xlane.f32.xlu1 %v2275_v42 }
0x13de   :  { %v2269_v44 = vpop.f32.mrb[28].mxu1 }
0x13df   :  { %v2274_v46 = vsel %vm5076_vm3, -1e+30, %v2269_v44  ;;  %v4397_v47 = vpop.f32.mrb[29].mxu1 }
0x13e0   :  { %v2278_v48 = vsel %vm273_vm2, %v2274_v46, -inf }
0x13e1   :  { %2279 = vmax.xlane.f32.xlu0 %v2278_v48 }
0x13ee   :  { %2373 = vrot.lane.b32.xlu1 %v5308_v31, %s4851_s5 }
0x13f2   :  { %2451 = vrot.lane.b32.xlu1 %v5310_v33, %s4852_s9 }
0x13f6   :  { %2449 = vrot.lane.b32.xlu1 %v5318_v34, %s4853_s13 }
0x146a   :  { %v2277_v50 = vpop.xlane.xlu1 %2276 }
0x146b   :  { %v2281_v51 = vsub.f32 %v2273_v38, %v2277_v50 }
0x146d   :  { %v2283_v52 = vmul.f32 1.442695, %v2281_v51 }
0x146e   :  { %v2280_v53 = vpop.xlane.xlu0 %2279  ;;  %v2374_v61 = vpop.permute.xlu1 %2373 }
0x146f   :  { %4751 = vpow2.f32 %v2283_v52  ;;  %v2282_v54 = vsub.f32 %v2274_v46, %v2280_v53 }
0x1471   :  { %v2285_v39 = vmul.f32 1.442695, %v2282_v54 }
0x1472   :  { %v2452_v62 = vpop.permute.xlu1 %2451 }
0x1473   :  { %4753 = vpow2.f32 %v2285_v39 }
0x1476   :  { %v2450_v63 = vpop.permute.xlu1 %2449 }
0x1479   :  { %v4752_v55 = vpop.eup %4751 }
0x147a   :  { %v2287_v56 = vsel %vm273_vm2, %v4752_v55, 0.0 }
0x147b   :  { %2288 = vadd.xlane.f32.xlu0 %v2287_v56 }
0x147d   :  { %v4754_v57 = vpop.eup %4753 }
0x147e   :  { %v2290_v60 = vsel %vm273_vm2, %v4754_v57, 0.0 }
0x147f   :  { %2291 = vadd.xlane.f32.xlu1 %v2290_v60 }
0x1490   :  { %2527 = vrot.lane.b32.xlu1 %v5327_v35, %s4853_s13 }
0x1491   :  { %2297 = vrot.lane.b32.xlu0 %v5310_v33, %s4851_s5 }
0x1495   :  { %2529 = vrot.lane.b32.xlu0 %v5308_v31, %s4852_s9 }
0x1508   :  { %v2289_v2 = vpop.xlane.xlu0 %2288 }
0x1509   :  { %4755 = vrcp.f32 %v2289_v2 }
0x150c   :  { %v2292_v28 = vpop.xlane.xlu1 %2291  ;;  %v2298_v3 = vpop.permute.xlu0 %2297 }
0x150d   :  { %4757 = vrcp.f32 %v2292_v28  ;;  %4399 = vmatpush3.msra.mxu1 %v2298_v3 }
0x150e   :  { %4403 = vmatprep.subr.mxu1 %v4848_v36 }
0x1510   :  { %v2530_v6 = vpop.permute.xlu0 %2529  ;;  %v2528_v7 = vpop.permute.xlu1 %2527 }
0x1513   :  { %v4756_v29 = vpop.eup %4755 }
0x1514   :  { %v2294_v41 = vmul.f32 %v4756_v29, %v4752_v55 }
0x1516   :  { %4401 = vmatmul.mubr.msk.f32.vlgmr.msra.gmra.mrb[30].mxu1 %vm273_vm2, %v2294_v41 }
0x1517   :  { %v4758_v4 = vpop.eup %4757  ;;  %4404 = vmatpush3.msra.mxu1 %v2374_v61  ;;  %4405 = vmatprep.mubr.msk.f32.mxu1 %vm4849_vm1, %v4848_v36 }
0x1518   :  { %v2296_v5 = vmul.f32 %v4758_v4, %v4754_v57  ;;  %4408 = vmatprep.subr.mxu1 %v4848_v36 }
0x151a   :  { %4406 = vmatmul.mubr.msk.f32.vlgmr.msra.gmra.mrb[32].mxu1 %vm273_vm2, %v2296_v5 }
0x151b   :  { %4410 = vmatprep.mubr.msk.f32.mxu1 %vm4849_vm1, %v4848_v36 }
0x151e   :  { %4409 = vmatpush3.xpose.msk.msra.mxu1 %vm273_vm2, %v2452_v62 }
0x151f   :  { %4413 = vmatprep.subr.mxu1 %v4848_v36 }
0x1521   :  { %4411 = vmatmul.mubr.msk.f32.vlgmr.msra.gmra.mrb[34].mxu1 %vm273_vm2, %v2450_v63 }
0x1522   :  { %4414 = vmatpush3.xpose.msk.msra.mxu1 %vm273_vm2, %v2530_v6  ;;  %4415 = vmatprep.mubr.msk.f32.mxu1 %vm4849_vm1, %v4848_v36 }
0x1523   :  { %4423 = vmatprep.subr.mxu1 %v4848_v36 }
0x1525   :  { %4416 = vmatmul.mubr.msk.f32.vlgmr.msra.gmra.mrb[36].mxu1 %vm273_vm2, %v2528_v7 }
0x1526   :  { %4425 = vmatprep.mubr.msk.f32.mxu1 %vm4849_vm1, %v4848_v36 }
0x15e9   :  { %v5372_v8 = vpop.f32.mrb[30].mxu1 }
0x15ea   :  { %v4402_v9 = vpop.f32.mrb[31].mxu1 }
0x15ed   :  { %v5374_v10 = vpop.f32.mrb[32].mxu1 }
0x15ee   :  { %v4407_v11 = vpop.f32.mrb[33].mxu1 }
0x15f4   :  { %v2523_v12 = vpop.f32.mrb[34].mxu1 }
0x15f5   :  { %v2605_v13 = vsel %vm5076_vm3, -1e+30, %v2523_v12  ;;  %v4412_v14 = vpop.f32.mrb[35].mxu1 }
0x15f6   :  { %v2607_v15 = vsel %vm273_vm2, %v2605_v13, -inf }
0x15f7   :  { %2608 = vmax.xlane.f32.xlu0 %v2607_v15 }
0x15f8   :  { %v2601_v16 = vpop.f32.mrb[36].mxu1 }
0x15f9   :  { %v2606_v45 = vsel %vm5076_vm3, -1e+30, %v2601_v16  ;;  %v4417_v17 = vpop.f32.mrb[37].mxu1 }
0x15fa   :  { %v2610_v18 = vsel %vm273_vm2, %v2606_v45, -inf }
0x15fb   :  { %2611 = vmax.xlane.f32.xlu1 %v2610_v18 }
0x160c   :  { %2705 = vrot.lane.b32.xlu1 %v5308_v31, %s4854_s25 }
0x160d   :  { %2629 = vrot.lane.b32.xlu0 %v5310_v33, %s4854_s25 }
0x1610   :  { %2783 = vrot.lane.b32.xlu1 %v5310_v33, %s4855_s29 }
0x1614   :  { %2861 = vrot.lane.b32.xlu1 %v5308_v31, %s4855_s29 }
0x1618   :  { %2859 = vrot.lane.b32.xlu1 %v5327_v35, %s4856_s7 }
0x1684   :  { %v2609_v19 = vpop.xlane.xlu0 %2608 }
0x1685   :  { %v2613_v20 = vsub.f32 %v2605_v13, %v2609_v19 }
0x1687   :  { %v2615_v21 = vmul.f32 1.442695, %v2613_v20 }
0x1688   :  { %v2630_v23 = vpop.permute.xlu0 %2629  ;;  %v2612_v22 = vpop.xlane.xlu1 %2611 }
0x1689   :  { %4759 = vpow2.f32 %v2615_v21  ;;  %v2614_v25 = vsub.f32 %v2606_v45, %v2612_v22  ;;  %4419 = vmatpush3.msra.mxu0 %v2630_v23 }
0x168a   :  { %4428 = vmatprep.subr.mxu0 %v4848_v36 }
0x168b   :  { %v2617_v43 = vmul.f32 1.442695, %v2614_v25 }
0x168c   :  { %v2706_v26 = vpop.permute.xlu1 %2705 }
0x168d   :  { %4761 = vpow2.f32 %v2617_v43  ;;  %4424 = vmatpush3.msra.mxu1 %v2706_v26 }
0x168e   :  { %4433 = vmatprep.subr.mxu1 %v4848_v36 }
0x1690   :  { %v2784_v37 = vpop.permute.xlu1 %2783 }
0x1693   :  { %v4760_v27 = vpop.eup %4759 }
0x1694   :  { %v2619_v24 = vsel %vm273_vm2, %v4760_v27, 0.0  ;;  %v2862_v44 = vpop.permute.xlu1 %2861 }
0x1695   :  { %2620 = vadd.xlane.f32.xlu0 %v2619_v24 }
0x1697   :  { %v4762_v30 = vpop.eup %4761 }
0x1698   :  { %v2622_v32 = vsel %vm273_vm2, %v4762_v30, 0.0  ;;  %v2860_v48 = vpop.permute.xlu1 %2859 }
0x1699   :  { %2623 = vadd.xlane.f32.xlu0 %v2622_v32 }
0x16af   :  { %2781 = vrot.lane.b32.xlu0 %v5318_v34, %s4856_s7 }
0x1722   :  { %v2621_v1 = vpop.xlane.xlu0 %2620 }
0x1723   :  { %4763 = vrcp.f32 %v2621_v1 }
0x1726   :  { %v2624_v0 = vpop.xlane.xlu0 %2623 }
0x1727   :  { %4765 = vrcp.f32 %v2624_v0 }
0x172a   :  { %v2782_v47 = vpop.permute.xlu0 %2781 }
0x172d   :  { %v4764_v38 = vpop.eup %4763 }
0x172e   :  { %v2626_v40 = vmul.f32 %v4764_v38, %v4760_v27 }
0x1730   :  { %4421 = vmatmul.mubr.msk.f32.vlgmr.msra.gmra.mrb[16].mxu0 %vm273_vm2, %v2626_v40 }
0x1731   :  { %v4766_v42 = vpop.eup %4765  ;;  %4429 = vmatpush3.xpose.msk.msra.mxu0 %vm273_vm2, %v2784_v37  ;;  %4430 = vmatprep.mubr.msk.f32.mxu0 %vm4849_vm1, %v4848_v36 }
0x1732   :  { %v2628_v46 = vmul.f32 %v4766_v42, %v4762_v30  ;;  %4438 = vmatprep.subr.mxu0 %v4848_v36 }
0x1734   :  { %4426 = vmatmul.mubr.msk.f32.vlgmr.msra.gmra.mrb[38].mxu1 %vm273_vm2, %v2628_v46  ;;  %4431 = vmatmul.mubr.msk.f32.vlgmr.msra.gmra.mrb[18].mxu0 %vm273_vm2, %v2782_v47 }
0x1735   :  { %4434 = vmatpush3.xpose.msk.msra.mxu1 %vm273_vm2, %v2862_v44  ;;  %4435 = vmatprep.mubr.msk.f32.mxu1 %vm4849_vm1, %v4848_v36 }
0x1736   :  { %4443 = vmatprep.subr.mxu1 %v4848_v36  ;;  %4440 = vmatprep.mubr.msk.f32.mxu0 %vm4849_vm1, %v4848_v36 }
0x1738   :  { %4436 = vmatmul.mubr.msk.f32.vlgmr.msra.gmra.mrb[40].mxu1 %vm273_vm2, %v2860_v48 }
0x1739   :  { %4445 = vmatprep.mubr.msk.f32.mxu1 %vm4849_vm1, %v4848_v36 }
0x1803   :  { %v5414_v50 = vpop.f32.mrb[16].mxu0 }
0x1804   :  { %v4422_v51 = vpop.f32.mrb[17].mxu0 }
0x1807   :  { %v5416_v52 = vpop.f32.mrb[38].mxu1  ;;  %v2855_v53 = vpop.f32.mrb[18].mxu0 }
0x1808   :  { %v2937_v54 = vsel %vm5076_vm3, -1e+30, %v2855_v53  ;;  %v4427_v39 = vpop.f32.mrb[39].mxu1  ;;  %v4432_v55 = vpop.f32.mrb[19].mxu0 }
0x1809   :  { %v2939_v56 = vsel %vm273_vm2, %v2937_v54, -inf  ;;  %v3475_v39 = vld [vmem:[%s5574_s8] sm:$0xff] }
0x180a   :  { %2940 = vmax.xlane.f32.xlu0 %v2939_v56  ;;  %v3477_v56 = vld [vmem:[%s5574_s8 + $0x10] sm:$0xff] }
0x180b   :  { %v2933_v57 = vpop.f32.mrb[40].mxu1 }
0x180c   :  { %v2938_v60 = vsel %vm5076_vm3, -1e+30, %v2933_v57  ;;  %v4437_v61 = vpop.f32.mrb[41].mxu1  ;;  %v3478_v57 = vld [vmem:[%s5574_s8 + $0x18] sm:$0xff] }
0x180d   :  { %v2942_v62 = vsel %vm273_vm2, %v2938_v60, -inf }
0x180e   :  { %2943 = vmax.xlane.f32.xlu1 %v2942_v62 }
0x181f   :  { %3037 = vrot.lane.b32.xlu1 %v5308_v31, %s4857_s10 }
0x1820   :  { %2961 = vrot.lane.b32.xlu0 %v5310_v33, %s4857_s10 }
0x1823   :  { %3115 = vrot.lane.b32.xlu1 %v5310_v33, %s4858_s11 }
0x1827   :  { %3193 = vrot.lane.b32.xlu1 %v5308_v31, %s4858_s11 }
0x182b   :  { %3191 = vrot.lane.b32.xlu1 %v5327_v35, %s4859_s15 }
0x1897   :  { %v2941_v63 = vpop.xlane.xlu0 %2940 }
0x1898   :  { %v2945_v2 = vsub.f32 %v2937_v54, %v2941_v63 }
0x189a   :  { %v2947_v28 = vmul.f32 1.442695, %v2945_v2 }
0x189b   :  { %v2962_v3 = vpop.permute.xlu0 %2961  ;;  %v2944_v29 = vpop.xlane.xlu1 %2943 }
0x189c   :  { %4767 = vpow2.f32 %v2947_v28  ;;  %v2946_v41 = vsub.f32 %v2938_v60, %v2944_v29  ;;  %4439 = vmatpush3.msra.mxu0 %v2962_v3  ;;  %v4604_v60 = vpack.c.bf16 %v3478_v57, %v3477_v56  ;;  %v3726_v56 = vld [vmem:[%s5577_s24 + $0x18] sm:$0xff] }
0x189d   :  { %4448 = vmatprep.subr.mxu0 %v4848_v36 }
0x189e   :  { %v2949_v4 = vmul.f32 1.442695, %v2946_v41 }
0x189f   :  { %v3038_v5 = vpop.permute.xlu1 %3037 }
0x18a0   :  { %4769 = vpow2.f32 %v2949_v4  ;;  %4444 = vmatpush3.msra.mxu1 %v3038_v5 }
0x18a1   :  { %4453 = vmatprep.subr.mxu1 %v4848_v36 }
0x18a3   :  { %v3116_v13 = vpop.permute.xlu1 %3115 }
0x18a6   :  { %v4768_v6 = vpop.eup %4767 }
0x18a7   :  { %v2951_v7 = vsel %vm273_vm2, %v4768_v6, 0.0  ;;  %v3194_v45 = vpop.permute.xlu1 %3193 }
0x18a8   :  { %2952 = vadd.xlane.f32.xlu0 %v2951_v7 }
0x18aa   :  { %v4770_v35 = vpop.eup %4769 }
0x18ab   :  { %v2954_v9 = vsel %vm273_vm2, %v4770_v35, 0.0  ;;  %v3192_v18 = vpop.permute.xlu1 %3191 }
0x18ac   :  { %2955 = vadd.xlane.f32.xlu0 %v2954_v9 }
0x18c2   :  { %3113 = vrot.lane.b32.xlu0 %v5318_v34, %s4859_s15 }
0x1935   :  { %v2953_v11 = vpop.xlane.xlu0 %2952 }
0x1936   :  { %4771 = vrcp.f32 %v2953_v11 }
0x1939   :  { %v2956_v12 = vpop.xlane.xlu0 %2955 }
0x193a   :  { %4773 = vrcp.f32 %v2956_v12 }
0x193d   :  { %v3114_v34 = vpop.permute.xlu0 %3113 }
0x1940   :  { %v4772_v14 = vpop.eup %4771 }
0x1941   :  { %v2958_v15 = vmul.f32 %v4772_v14, %v4768_v6 }
0x1943   :  { %4441 = vmatmul.mubr.msk.f32.vlgmr.msra.gmra.mrb[20].mxu0 %vm273_vm2, %v2958_v15 }
0x1944   :  { %v4774_v16 = vpop.eup %4773  ;;  %4449 = vmatpush3.xpose.msk.msra.mxu0 %vm273_vm2, %v3116_v13  ;;  %4450 = vmatprep.mubr.msk.f32.mxu0 %vm4849_vm1, %v4848_v36  ;;  %v4073_v13 = vld [vmem:[%s5575_s14] ss:$0 sm:$0xff] }
0x1945   :  { %v2960_v17 = vmul.f32 %v4774_v16, %v4770_v35  ;;  %4458 = vmatprep.subr.mxu0 %v4848_v36 }
0x1947   :  { %4446 = vmatmul.mubr.msk.f32.vlgmr.msra.gmra.mrb[42].mxu1 %vm273_vm2, %v2960_v17  ;;  %4451 = vmatmul.mubr.msk.f32.vlgmr.msra.gmra.mrb[22].mxu0 %vm273_vm2, %v3114_v34 }
0x1948   :  { %4454 = vmatpush3.xpose.msk.msra.mxu1 %vm273_vm2, %v3194_v45  ;;  %4455 = vmatprep.mubr.msk.f32.mxu1 %vm4849_vm1, %v4848_v36 }
0x1949   :  { %4463 = vmatprep.subr.mxu1 %v4848_v36  ;;  %4460 = vmatprep.mubr.msk.f32.mxu0 %vm4849_vm1, %v4848_v36 }
0x194b   :  { %4456 = vmatmul.mubr.msk.f32.vlgmr.msra.gmra.mrb[44].mxu1 %vm273_vm2, %v3192_v18 }
0x194c   :  { %4465 = vmatprep.mubr.msk.f32.mxu1 %vm4849_vm1, %v4848_v36 }
0x1a16   :  { %v3033_v19 = vpop.f32.mrb[20].mxu0 }
0x1a17   :  { %v4442_v20 = vpop.f32.mrb[21].mxu0 }
0x1a1a   :  { %v3109_v21 = vpop.f32.mrb[42].mxu1  ;;  %v3187_v23 = vpop.f32.mrb[22].mxu0 }
0x1a1b   :  { %v3269_v22 = vsel %vm5076_vm3, -1e+30, %v3187_v23  ;;  %v4447_v25 = vpop.f32.mrb[43].mxu1  ;;  %v4452_v43 = vpop.f32.mrb[23].mxu0 }
0x1a1c   :  { %v3271_v26 = vsel %vm273_vm2, %v3269_v22, -inf }
0x1a1d   :  { %3272 = vmax.xlane.f32.xlu0 %v3271_v26  ;;  %v3613_v26 = vld [vmem:[%s5576_s19] sm:$0xff] }
0x1a1e   :  { %v3265_v27 = vpop.f32.mrb[44].mxu1 }
0x1a1f   :  { %v3270_v24 = vsel %vm5076_vm3, -1e+30, %v3265_v27  ;;  %v4457_v30 = vpop.f32.mrb[45].mxu1  ;;  %v3614_v27 = vld [vmem:[%s5576_s19 + $0x8] sm:$0xff] }
0x1a20   :  { %v3274_v32 = vsel %vm273_vm2, %v3270_v24, -inf  ;;  %v3615_v30 = vld [vmem:[%s5576_s19 + $0x10] sm:$0xff] }
0x1a21   :  { %3275 = vmax.xlane.f32.xlu1 %v3274_v32  ;;  %v3616_v32 = vld [vmem:[%s5576_s19 + $0x18] sm:$0xff] }
0x1a32   :  { %3369 = vrot.lane.b32.xlu1 %v5308_v31, %s4860_s16 }
0x1a36   :  { %3447 = vrot.lane.b32.xlu1 %v5414_v50, %s4861_s18 }
0x1a3a   :  { %3449 = vrot.lane.b32.xlu1 %v5416_v52, %s4861_s18 }
0x1a3e   :  { %3457 = vrot.lane.b32.xlu1 %v3109_v21, %s4862_s22 }
0x1aaa   :  { %v3273_v36 = vpop.xlane.xlu0 %3272 }
0x1aab   :  { %v3277_v1 = vsub.f32 %v3269_v22, %v3273_v36  ;;  %v4612_v36 = vpack.c.bf16 %v3616_v32, %v3615_v30 }
0x1aad   :  { %v3279_v0 = vmul.f32 1.442695, %v3277_v1  ;;  %v3723_v1 = vld [vmem:[%s5577_s24] sm:$0xff] }
0x1aae   :  { %v3276_v49 = vpop.xlane.xlu1 %3275 }
0x1aaf   :  { %4775 = vpow2.f32 %v3279_v0  ;;  %v3278_v37 = vsub.f32 %v3270_v24, %v3276_v49  ;;  %v4608_v24 = vpack.c.bf16 %v3614_v27, %v3613_v26  ;;  %v3724_v0 = vld [vmem:[%s5577_s24 + $0x8] sm:$0xff] }
0x1ab0   :  { %v4616_v49 = vpack.c.bf16 %v3724_v0, %v3723_v1  ;;  %v4081_v0 = vld [vmem:[%s5581_s28] ss:$0 sm:$0xff] }
0x1ab1   :  { %v3281_v38 = vmul.f32 1.442695, %v3278_v37 }
0x1ab2   :  { %v3370_v40 = vpop.permute.xlu1 %3369 }
0x1ab3   :  { %4777 = vpow2.f32 %v3281_v38  ;;  %4464 = vmatpush3.msra.mxu1 %v3370_v40 }
0x1ab4   :  { %4609 = vmatprep.subr.bf16.mxu1 %v4608_v24 }
0x1ab6   :  { %v3448_v28 = vpop.permute.xlu1 %3447 }
0x1ab7   :  { %v3469_v41 = vsel %vm273_vm2, %v5372_v8, %v3448_v28 }
0x1ab9   :  { %v4776_v42 = vpop.eup %4775 }
0x1aba   :  { %v3283_v31 = vsel %vm273_vm2, %v4776_v42, 0.0  ;;  %v3450_v3 = vpop.permute.xlu1 %3449 }
0x1abb   :  { %3284 = vadd.xlane.f32.xlu0 %v3283_v31  ;;  %v3470_v35 = vsel %vm273_vm2, %v5374_v10, %v3450_v3  ;;  %v3731_v3 = vld [vmem:[%s5577_s24 + $0x40] sm:$0xff] }
0x1abd   :  { %v4778_v44 = vpop.eup %4777 }
0x1abe   :  { %v3286_v46 = vsel %vm273_vm2, %v4778_v44, 0.0  ;;  %v3458_v4 = vpop.permute.xlu1 %3457 }
0x1abf   :  { %3287 = vadd.xlane.f32.xlu0 %v3286_v46  ;;  %v3472_v9 = vsel %vm1625_vm5, %v3470_v35, %v3458_v4  ;;  %v3733_v4 = vld [vmem:[%s5577_s24 + $0x50] sm:$0xff]  ;;  %v3736_v35 = vld [vmem:[%s5577_s24 + $0x68] sm:$0xff] }
0x1ad5   :  { %3293 = vrot.lane.b32.xlu0 %v5310_v33, %s4860_s16  ;;  %v3476_v33 = vld [vmem:[%s5574_s8 + $0x8] sm:$0xff] }
0x1ad6   :  { %v4600_v55 = vpack.c.bf16 %v3476_v33, %v3475_v39 }
0x1ad9   :  { %3455 = vrot.lane.b32.xlu0 %v3033_v19, %s4862_s22 }
0x1b48   :  { %v3285_v47 = vpop.xlane.xlu0 %3284 }
0x1b49   :  { %4779 = vrcp.f32 %v3285_v47  ;;  %v4076_v47 = vld [vmem:[%s5578_s30] ss:$0 sm:$0xff] }
0x1b4c   :  { %v3288_v48 = vpop.xlane.xlu0 %3287 }
0x1b4d   :  { %4781 = vrcp.f32 %v3288_v48 }
0x1b50   :  { %v3294_v50 = vpop.permute.xlu0 %3293 }
0x1b51   :  { %4459 = vmatpush3.msra.mxu0 %v3294_v50  ;;  %v4077_v50 = vld [vmem:[%s5579_s6] ss:$0 sm:$0xff] }
0x1b52   :  { %4601 = vmatprep.subr.bf16.mxu0 %v4600_v55 }
0x1b53   :  { %v4780_v51 = vpop.eup %4779 }
0x1b54   :  { %v3290_v52 = vmul.f32 %v4780_v51, %v4776_v42  ;;  %v3456_v29 = vpop.permute.xlu0 %3455 }
0x1b55   :  { %v3471_v5 = vsel %vm1625_vm5, %v3469_v41, %v3456_v29  ;;  %v3732_v29 = vld [vmem:[%s5577_s24 + $0x48] sm:$0xff] }
0x1b56   :  { %4461 = vmatmul.mubr.msk.f32.vlgmr.msra.gmra.mrb[24].mxu0 %vm273_vm2, %v3290_v52  ;;  %v4632_v41 = vpack.c.bf16 %v3732_v29, %v3731_v3 }
0x1b57   :  { %v4782_v53 = vpop.eup %4781  ;;  %4603 = vmatpush3.bf16.msra.mxu0 %v4600_v55  ;;  %v3725_v55 = vld [vmem:[%s5577_s24 + $0x10] sm:$0xff] }
0x1b58   :  { %v3292_v54 = vmul.f32 %v4782_v53, %v4778_v44  ;;  %4605 = vmatprep.subr.bf16.mxu0 %v4604_v60  ;;  %v4620_v57 = vpack.c.bf16 %v3726_v56, %v3725_v55  ;;  %v3868_v55 = vld [vmem:[%s5009_s20 + $0x8] sm:$0xff] }
0x1b5a   :  { %4466 = vmatmul.mubr.msk.f32.vlgmr.msra.gmra.mrb[46].mxu1 %vm273_vm2, %v3292_v54 }
0x1b5b   :  { %4607 = vmatpush3.bf16.msra.mxu0 %v4604_v60  ;;  %4611 = vmatpush3.bf16.msra.mxu1 %v4608_v24  ;;  %v3727_v60 = vld [vmem:[%s5577_s24 + $0x20] sm:$0xff] }
0x1b5c   :  { %4613 = vmatprep.subr.bf16.mxu1 %v4612_v36  ;;  %4617 = vmatprep.subr.bf16.mxu0 %v4616_v49 }
0x1b5f   :  { %4615 = vmatpush3.bf16.msra.mxu1 %v4612_v36 }
0x1c29   :  { %v3365_v61 = vpop.f32.mrb[24].mxu0 }
0x1c2a   :  { %3463 = vrot.lane.b32.xlu0 %v3365_v61, %s4863_s23  ;;  %v4462_v62 = vpop.f32.mrb[25].mxu0  ;;  %v3728_v61 = vld [vmem:[%s5577_s24 + $0x28] sm:$0xff] }
0x1c2b   :  { %v4624_v62 = vpack.c.bf16 %v3728_v61, %v3727_v60  ;;  %v3870_v60 = vld [vmem:[%s5009_s20 + $0x18] sm:$0xff] }
0x1c2d   :  { %v3441_v63 = vpop.f32.mrb[46].mxu1 }
0x1c2e   :  { %3465 = vrot.lane.b32.xlu1 %v3441_v63, %s4863_s23  ;;  %v4467_v2 = vpop.f32.mrb[47].mxu1  ;;  %v3729_v63 = vld [vmem:[%s5577_s24 + $0x30] sm:$0xff] }
0x1c2f   :  { %v3730_v2 = vld [vmem:[%s5577_s24 + $0x38] sm:$0xff] }
0x1c30   :  { %v4628_v28 = vpack.c.bf16 %v3730_v2, %v3729_v63 }
0x1c9c   :  { %v3464_v6 = vpop.permute.xlu0 %3463 }
0x1c9d   :  { %v3473_v7 = vsel %vm1628_vm4, %v3471_v5, %v3464_v6  ;;  %v3734_v5 = vld [vmem:[%s5577_s24 + $0x58] sm:$0xff] }
0x1c9e   :  { %4476 = vmatprep.mubr.msk.f32.mxu0 %vm132_vm0, %v3473_v7  ;;  %v4636_v6 = vpack.c.bf16 %v3734_v5, %v3733_v4  ;;  %v3735_v7 = vld [vmem:[%s5577_s24 + $0x60] sm:$0xff] }
0x1c9f   :  { %v4082_v4 = vld [vmem:[%s5582_s1] ss:$0 sm:$0xff] }
0x1ca0   :  { %v3466_v11 = vpop.permute.xlu1 %3465 }
0x1ca1   :  { %v3474_v12 = vsel %vm1628_vm4, %v3472_v9, %v3466_v11  ;;  %v4640_v9 = vpack.c.bf16 %v3736_v35, %v3735_v7  ;;  %v3737_v11 = vld [vmem:[%s5577_s24 + $0x70] sm:$0xff]  ;;  %v4083_v35 = vld [vmem:[%s5004_s12] ss:$0 sm:$0xff] }
0x1ca2   :  { %4477 = vmatmul.mubr.msk.f32.vlgmr.msra.gmra.mrb[26].mxu0 %vm132_vm0, %v3474_v12  ;;  %v3738_v12 = vld [vmem:[%s5577_s24 + $0x78] sm:$0xff] }
0x1ca3   :  { %4619 = vmatpush3.bf16.msra.mxu0 %v4616_v49 }
0x1ca4   :  { %4621 = vmatprep.subr.bf16.mxu0 %v4620_v57 }
0x1ca7   :  { %4623 = vmatpush3.bf16.msra.mxu0 %v4620_v57  ;;  %v3869_v57 = vld [vmem:[%s5009_s20 + $0x10] sm:$0xff] }
0x1ca8   :  { %4625 = vmatprep.subr.bf16.mxu0 %v4624_v62  ;;  %v4652_v61 = vpack.c.bf16 %v3870_v60, %v3869_v57 }
0x1cab   :  { %4627 = vmatpush3.bf16.msra.mxu0 %v4624_v62 }
0x1cac   :  { %4629 = vmatprep.subr.bf16.mxu0 %v4628_v28 }
0x1caf   :  { %4631 = vmatpush3.bf16.msra.mxu0 %v4628_v28 }
0x1cb0   :  { %4633 = vmatprep.subr.bf16.mxu0 %v4632_v41 }
0x1cb3   :  { %4635 = vmatpush3.bf16.msra.mxu0 %v4632_v41 }
0x1cb4   :  { %4637 = vmatprep.subr.bf16.mxu0 %v4636_v6 }
0x1cb7   :  { %4639 = vmatpush3.bf16.msra.mxu0 %v4636_v6 }
0x1cb8   :  { %4641 = vmatprep.subr.bf16.mxu0 %v4640_v9 }
0x1cbb   :  { %4643 = vmatpush3.bf16.msra.mxu0 %v4640_v9 }
0x1d75   :  { %v4478_v8 = vpop.f32.mrb[26].mxu0 }
0x1d76   :  { %v3564_v14 = vadd.f32 %v4478_v8, %v4073_v13  ;;  %v3558_v15 = vpop.f32.mrb[27].mxu0  ;;  %v4078_v8 = vld [vmem:[%s5580_s26] ss:$0 sm:$0xff] }
0x1d77   :  { %v3559_v16 = vadd.f32 %v4073_v13, %v3558_v15  ;;  %v4644_v13 = vpack.c.bf16 %v3738_v12, %v3737_v11 }
0x1d78   :  { %v5494_v45 = vadd.f32 %v3564_v14, %v5283_v58 }
0x1d79   :  { %v5497_v17 = vadd.f32 %v3559_v16, %v5286_v59  ;;  %4645 = vmatprep.subr.bf16.mxu0 %v4644_v13 }
0x1d7a   :  { %v3574_v10 = vsel %vm132_vm0, %v5494_v45, 0.0  ;;  %4647 = vmatpush3.bf16.msra.mxu0 %v4644_v13 }
0x1d7b   :  { %3575 = vadd.xlane.f32.xlu1 %v3574_v10  ;;  %v3571_v34 = vsel %vm132_vm0, %v5497_v17, 0.0 }
0x1d7c   :  { %3572 = vadd.xlane.f32.xlu0 %v3571_v34 }
0x1e08   :  { %v3576_v18 = vpop.xlane.xlu1 %3575 }
0x1e09   :  { %v3578_v19 = vmul.f32 0.03125, %v3576_v18  ;;  %v3573_v20 = vpop.xlane.xlu0 %3572 }
0x1e0a   :  { %v3577_v58 = vmul.f32 0.03125, %v3573_v20 }
0x1e0b   :  { %v3580_v21 = vsub.f32 %v5494_v45, %v3578_v19 }
0x1e0c   :  { %v3579_v59 = vsub.f32 %v5497_v17, %v3577_v58 }
0x1e0d   :  { %v3582_v25 = vmul.f32 %v3580_v21, %v3580_v21 }
0x1e0e   :  { %v3581_v23 = vmul.f32 %v3579_v59, %v3579_v59 }
0x1e0f   :  { %v3586_v43 = vsel %vm132_vm0, %v3582_v25, 0.0 }
0x1e10   :  { %v3583_v22 = vsel %vm132_vm0, %v3581_v23, 0.0 }
0x1e11   :  { %3584 = vadd.xlane.f32.xlu0 %v3583_v22 }
0x1e15   :  { %3587 = vadd.xlane.f32.xlu0 %v3586_v43 }
0x1e9e   :  { %v3585_v37 = vpop.xlane.xlu0 %3584 }
0x1e9f   :  { %v3589_v38 = vmul.f32 0.03125, %v3585_v37 }
0x1ea1   :  { %v3591_v40 = vadd.f32 1e-05, %v3589_v38 }
0x1ea2   :  { %v3588_v42 = vpop.xlane.xlu0 %3587 }
0x1ea3   :  { %4783 = vrsqrt.f32 %v3591_v40  ;;  %v3590_v31 = vmul.f32 0.03125, %v3588_v42 }
0x1ea5   :  { %v3592_v44 = vadd.f32 1e-05, %v3590_v31 }
0x1ea7   :  { %4785 = vrsqrt.f32 %v3592_v44 }
0x1ead   :  { %v4784_v46 = vpop.eup %4783 }
0x1eae   :  { %v3595_v48 = vmul.f32 %v4784_v46, %v3579_v59 }
0x1eb0   :  { %v3603_v51 = vmul.f32 %v4076_v47, %v3595_v48 }
0x1eb1   :  { %v4786_v52 = vpop.eup %4785 }
0x1eb2   :  { %v3596_v53 = vmul.f32 %v4786_v52, %v3580_v21  ;;  %v3611_v54 = vadd.f32 %v4077_v50, %v3603_v51 }
0x1eb4   :  { %v3604_v39 = vmul.f32 %v4076_v47, %v3596_v53  ;;  %4487 = vmatprep.mubr.msk.f32.mxu1 %vm132_vm0, %v3611_v54 }
0x1eb6   :  { %v3612_v33 = vadd.f32 %v4077_v50, %v3604_v39 }
0x1eb8   :  { %4488 = vmatmul.mubr.msk.f32.vlgmr.msra.gmra.mrb[48].mxu1 %vm132_vm0, %v3612_v33  ;;  %v3867_v33 = vld [vmem:[%s5009_s20] sm:$0xff]  ;;  %s4864_s20 = smov [#allocation2]  }
0x1eb9   :  { %v4648_v56 = vpack.c.bf16 %v3868_v55, %v3867_v33  ;;  %s3966_s2 = sshll.u32 %s4864_s20, 4  ;;  %s3967_s2 = int_to_ptr.vmem [resolvable:$true] %s3966_s2 }
0x1eba   :  { %s4795_s0 = scalar_lea.vmem %s3967_s2, 256  ;;  %p4800_p1 = scmp.lt.s32.totalorder %s3967_s2, %s3967_s2 }
0x1ebb   :  { %4649 = vmatprep.subr.bf16.mxu1 %v4648_v56  ;;  %p4796_p0 = scmp.ne.s32.totalorder %s3967_s2, %s4795_s0  ;;  %p4801_p2 = scmp.lt.s32.totalorder %s4795_s0, %s4795_s0 }
0x1ebc   :  { %4651 = vmatpush3.bf16.msra.mxu1 %v4648_v56 }
0x1ebd   :  { %4653 = vmatprep.subr.bf16.mxu1 %v4652_v61  ;;  %p4802_p3 = por %p4801_p2, %p4800_p1 }
0x1ebf   :  { %p4803_p4 = pnand %p4802_p3, %p4796_p0 }
0x1ec0   :  { %4655 = vmatpush3.bf16.msra.mxu1 %v4652_v61 }
0x1f8b   :  { %v4489_v14 = vpop.f32.mrb[48].mxu1 }
0x1f8c   :  { %v3702_v15 = vadd.f32 %v4489_v14, %v4078_v8  ;;  %v3696_v16 = vpop.f32.mrb[49].mxu1 }
0x1f8d   :  { %v3697_v10 = vadd.f32 %v4078_v8, %v3696_v16  ;;  %v4084_v8 = vld [vmem:[%s5014_s27] ss:$0 sm:$0xff] }
0x1f8e   :  { %v3708_v34 = vmul.f32 0.044715, %v3702_v15  ;;  %v3706_v32 = vmul.f32 0.5, %v3702_v15 }
0x1f8f   :  { %v3707_v18 = vmul.f32 0.044715, %v3697_v10  ;;  %v3705_v24 = vmul.f32 0.5, %v3697_v10 }
0x1f90   :  { %v3710_v19 = vmul.f32 %v3708_v34, %v3702_v15 }
0x1f91   :  { %v3709_v20 = vmul.f32 %v3707_v18, %v3697_v10 }
0x1f92   :  { %v3712_v58 = vmul.f32 %v3710_v19, %v3702_v15 }
0x1f93   :  { %v3711_v21 = vmul.f32 %v3709_v20, %v3697_v10 }
0x1f94   :  { %v3714_v59 = vadd.f32 %v3712_v58, %v3702_v15 }
0x1f95   :  { %v3713_v23 = vadd.f32 %v3711_v21, %v3697_v10 }
0x1f96   :  { %v3716_v22 = vmul.f32 0.7978846, %v3714_v59 }
0x1f97   :  { %v3715_v25 = vmul.f32 0.7978846, %v3713_v23 }
0x1f98   :  { %4787 = vtanh.f32 %v3716_v22 }
0x1f99   :  { %4789 = vtanh.f32 %v3715_v25 }
0x1fa2   :  { %v4788_v43 = vpop.eup %4787 }
0x1fa3   :  { %v4790_v26 = vpop.eup %4789  ;;  %v3720_v27 = vadd.f32 1.0, %v4788_v43 }
0x1fa4   :  { %v3719_v30 = vadd.f32 1.0, %v4790_v26 }
0x1fa5   :  { %v3722_v1 = vmul.f32 %v3720_v27, %v3706_v32 }
0x1fa6   :  { %v3721_v36 = vmul.f32 %v3719_v30, %v3705_v24 }
0x1fa8   :  { %4522 = vmatprep.mubr.f32.mxu0 %v3721_v36 }
0x1fa9   :  { %4523 = vmatmul.mubr.f32.vlgmr.msra.gmra.mrb[28].mxu0 %v3722_v1 }
0x207c   :  { %v4524_v49 = vpop.f32.mrb[28].mxu0 }
0x207d   :  { %v3818_v37 = vadd.f32 %v4524_v49, %v4081_v0  ;;  %v3812_v38 = vpop.f32.mrb[29].mxu0 }
0x207e   :  { %v3813_v40 = vadd.f32 %v4081_v0, %v3812_v38 }
0x207f   :  { %v3822_v42 = vadd.f32 %v3818_v37, %v5494_v45 }
0x2080   :  { %v3821_v31 = vadd.f32 %v3813_v40, %v5497_v17 }
0x2081   :  { %v3828_v44 = vsel %vm132_vm0, %v3822_v42, 0.0 }
0x2082   :  { %3829 = vadd.xlane.f32.xlu1 %v3828_v44  ;;  %v3825_v46 = vsel %vm132_vm0, %v3821_v31, 0.0 }
0x2083   :  { %3826 = vadd.xlane.f32.xlu0 %v3825_v46 }
0x210f   :  { %v3830_v47 = vpop.xlane.xlu1 %3829 }
0x2110   :  { %v3832_v48 = vmul.f32 0.03125, %v3830_v47  ;;  %v3827_v50 = vpop.xlane.xlu0 %3826 }
0x2111   :  { %v3831_v51 = vmul.f32 0.03125, %v3827_v50 }
0x2112   :  { %v3834_v52 = vsub.f32 %v3822_v42, %v3832_v48 }
0x2113   :  { %v3833_v53 = vsub.f32 %v3821_v31, %v3831_v51 }
0x2114   :  { %v3836_v54 = vmul.f32 %v3834_v52, %v3834_v52 }
0x2115   :  { %v3835_v45 = vmul.f32 %v3833_v53, %v3833_v53 }
0x2116   :  { %v3840_v17 = vsel %vm132_vm0, %v3836_v54, 0.0 }
0x2117   :  { %3841 = vadd.xlane.f32.xlu1 %v3840_v17  ;;  %v3837_v39 = vsel %vm132_vm0, %v3835_v45, 0.0 }
0x2118   :  { %3838 = vadd.xlane.f32.xlu0 %v3837_v39 }
0x21a4   :  { %v3842_v62 = vpop.xlane.xlu1 %3841 }
0x21a5   :  { %v3844_v63 = vmul.f32 0.03125, %v3842_v62  ;;  %v3839_v2 = vpop.xlane.xlu0 %3838 }
0x21a6   :  { %v3843_v28 = vmul.f32 0.03125, %v3839_v2 }
0x21a7   :  { %v3846_v3 = vadd.f32 1e-05, %v3844_v63 }
0x21a8   :  { %v3845_v29 = vadd.f32 1e-05, %v3843_v28 }
0x21a9   :  { %4791 = vrsqrt.f32 %v3846_v3 }
0x21aa   :  { %4793 = vrsqrt.f32 %v3845_v29 }
0x21b3   :  { %v4792_v41 = vpop.eup %4791 }
0x21b4   :  { %v4794_v5 = vpop.eup %4793  ;;  %v3850_v6 = vmul.f32 %v4792_v41, %v3834_v52 }
0x21b5   :  { %v3849_v7 = vmul.f32 %v4794_v5, %v3833_v53 }
0x21b6   :  { %v3858_v9 = vmul.f32 %v4082_v4, %v3850_v6 }
0x21b7   :  { %v3857_v11 = vmul.f32 %v4082_v4, %v3849_v7 }
0x21b8   :  { %v3866_v13 = vadd.f32 %v4083_v35, %v3858_v9 }
0x21b9   :  { %v3865_v12 = vadd.f32 %v4083_v35, %v3857_v11 }
0x21bb   :  { %4533 = vmatprep.mubr.msk.f32.mxu1 %vm132_vm0, %v3865_v12 }
0x21bc   :  { %4534 = vmatmul.mubr.msk.f32.vlgmr.msra.gmra.mrb[50].mxu1 %vm132_vm0, %v3866_v13 }
0x228f   :  { %v4535_v14 = vpop.f32.mrb[50].mxu1 }
0x2290   :  { %v3956_v15 = vadd.f32 %v4535_v14, %v4084_v8  ;;  %v3950_v16 = vpop.f32.mrb[51].mxu1 }
0x2291   :  { %v3951_v10 = vadd.f32 %v4084_v8, %v3950_v16 }
0x2292   :  { %3960 = vst [vmem:[#allocation2 + $0x8] sm:$0xff] %v3956_v15 }
0x2293   :  { %3959 = vst [vmem:[#allocation2] sm:$0xff] %v3951_v10 }
0x2294   :  { %4806 = shalt.err (!%p4803_p4)
}
0x2295   :  { %s4807_s12 = scalar_lea.hbm %s5019_s4, 256 }
0x2296   :  { %p4808_p5 = scmp.ne.s32.totalorder %s5019_s4, %s4807_s12  ;;  %p4811_p6 = scmp.lt.u32.totalorder %s4807_s12, %s5019_s4 }
0x2298   :  { %p4813_p7 = pnand %p4811_p6, %p4808_p5 }
0x229a   :  { %4816 = shalt.err (!%p4813_p7)
}
0x229b   :  { %s4865_s27 = smov 128  }
0x229c   :  { %3972 = dma.vmem_to_hbm [thread:$0]  %s3967_s2, 256, %s5019_s4, [#allocation3], %s4865_s27, %s4865_s27, %s4861_s18  }
0x229d   :  { %4817 = dma.done.wait [#allocation3], 256  }
0x229e   :  { %4818 = vsyncadd [#allocation3], 4294967040 }
0x229f   :  { %3976 = vsyncpa [#allocation3], 1 }

</bundles_post_ra>
